<compile_context>
chip_gen: v7x
topology: tpu7x:2x2x1
jax: 0.10.0
libtpu: 0.0.40
codegen_flags: <defaults>
</compile_context>

<pallas_src>
import functools
import itertools
import math

import jax
import jax.numpy as jnp
from jax.experimental import pallas as pl
from jax.experimental.pallas import tpu as pltpu


_MAX_TRAIL_UNROLL = 64     # innermost-repeat copies unrolled as static stores
_MAX_STORES_PER_STEP = 64  # cap on total unrolled stores per grid step
_MAX_FOLD_COPIES = 8       # cap on leading-dim copies folded into one block


def _divisors(n):
    out = set()
    i = 1
    while i * i <= n:
        if n % i == 0:
            out.add(i)
            out.add(n // i)
        i += 1
    return sorted(out)


def _largest_divisor(n, cap, align=1):
    best = None
    for d in _divisors(n):
        if d <= cap and d % align == 0:
            best = d
    return best


def _smallest_aligned_divisor(n, align):
    for d in _divisors(n):
        if d % align == 0:
            return d
    return None


def _vmem_capacity_bytes():
    try:
        cap = int(getattr(pltpu.get_tpu_info(), "vmem_capacity_bytes"))
        if cap > 0:
            return cap
    except Exception:
        pass
    return 64 * 1024 * 1024  # conservative: v7x per-TensorCore VMEM


def _innermost_repeated(mults):
    for d in range(len(mults) - 1, -1, -1):
        if mults[d] > 1:
            return d
    return -1


def _make_repeat_kernel(kernel_axes, fold_dims, m_t):
    """kernel_axes: per-o_ref-axis tags; fold_dims: ((dim, mult), ...); static."""

    def kernel(x_ref, o_ref):
        xv = x_ref[...]
        # Direct sliced stores, one per output copy (all offsets are static, so
        # stores are unmasked whenever the minor width is lane-aligned).
        for combo in itertools.product(*(range(mult) for _, mult in fold_dims)):
            sel = {d: v for (d, _), v in zip(fold_dims, combo)}
            for k in range(m_t):
                idx = []
                for kind, d in kernel_axes:
                    if kind == "fold":
                        idx.append(sel[d])
                    elif kind == "trail":
                        idx.append(k)
                    else:  # data axis
                        idx.append(slice(None))
                o_ref[tuple(idx)] = xv

    return kernel


@functools.partial(jax.jit, static_argnames=("multiples", "target_block_bytes"))
def _repeat_impl(x, multiples, target_block_bytes=None):
    m = [int(v) for v in multiples]
    n = len(m)
    if n < x.ndim:
        raise ValueError("len(multiples) must be >= x.ndim (torch.repeat semantics)")

    # torch promotion: prepend singleton dims so ndim == len(multiples).
    x = x.reshape((1,) * (n - x.ndim) + x.shape)
    s = list(x.shape)
    out_shape = tuple(si * mi for si, mi in zip(s, m))
    itemsize = jnp.dtype(x.dtype).itemsize
    out_bytes = math.prod(out_shape) * itemsize

    if 0 in out_shape:
        return jnp.zeros(out_shape, x.dtype)
    if all(v == 1 for v in m):
        return x  # values identical to a copy (JAX value semantics)

    # --- narrow-minor fix-up (perf only) -------------------------------------
    # While the kernel's minor store width (flattened trailing extent) would be
    # short and not a multiple of 128 lanes, fold the innermost repeated dim
    # into the input with jnp.tile so the Pallas stores become lane-dense.
    # Keep at least one repeated dim for the kernel.
    while True:
        dstar = _innermost_repeated(m)
        c_trail = math.prod(s[dstar:])
        n_rep = sum(1 for v in m if v > 1)
        if n_rep >= 2 and c_trail % 128 != 0 and c_trail < 1024:
            reps = [1] * n
            reps[dstar] = m[dstar]
            x = jnp.tile(x, reps)
            s = list(x.shape)
            m[dstar] = 1
            continue
        break

    dstar = _innermost_repeated(m)

    # --- canonical problem: leading dims + flattened trailing axis ------------
    if dstar == 0:
        # Only the outermost dim is repeated: copies are whole-x slabs.  View x
        # as a tall 2D (R, L) slab (L lane-aligned when possible) so the copy
        # factor lives on a parallel grid axis and R can be grid-split.
        c_full = math.prod(s)
        L = _largest_divisor(c_full, min(2048, c_full), 128) or c_full
        lead_sizes = [c_full // L]
        lead_mults = [m[0]]
        c_trail = L
        m_t = 1
    else:
        lead_sizes = s[:dstar]
        lead_mults = m[:dstar]
        c_trail = math.prod(s[dstar:])
        m_t = m[dstar]

    # Innermost multiples beyond the unroll cap: hand the whole op to XLA
    # rather than emitting a huge unrolled store sequence.
    # TODO(synk): group large trailing-copy counts through a small loop instead.
    if m_t > _MAX_TRAIL_UNROLL:
        return jnp.tile(x, tuple(m))

    n_lead = len(lead_sizes)
    x_k = x.reshape(tuple(lead_sizes) + (c_trail,))

    # --- generation-aware block budget ----------------------------------------
    vmem_cap = _vmem_capacity_bytes()
    if target_block_bytes is not None:
        target = int(target_block_bytes)
    elif vmem_cap >= 96 * 1024 * 1024:   # v5e / v6e (128 MiB VMEM)
        target = 8 * 1024 * 1024
    else:                                # v7x (64 MiB VMEM)
        target = 4 * 1024 * 1024
    # Large outputs must land on >= 2 (parallel) grid steps so both v7x
    # TensorCores and the in/compute/out DMA pipeline are engaged.
    if out_bytes > 2 * 1024 * 1024:
        target = min(target, out_bytes // 2)
    target = max(target, 128 * itemsize)

    # --- trailing split (keeps the minor store lane-aligned) ------------------
    base = itemsize * m_t * c_trail
    if base <= target:
        c_blk = c_trail
    else:
        cap = max(128, target // (itemsize * m_t))
        c_blk = _largest_divisor(c_trail, cap, 128) or c_trail
    base = itemsize * m_t * c_blk

    # --- leading data-dim chunks (innermost kept whole first) -----------------
    chunks = [0] * n_lead
    rem = max(1, target // base)
    for d in range(n_lead - 1, -1, -1):
        sd = lead_sizes[d]
        if sd <= rem:
            c = sd
        elif d == n_lead - 1:
            # second-minor dim of the input block: must stay 8-aligned or full
            c = (_largest_divisor(sd, rem, 8)
                 or _smallest_aligned_divisor(sd, 8)
                 or sd)
        else:
            c = _largest_divisor(sd, rem, 1) or 1
        chunks[d] = c
        rem = max(1, rem // c)

    # --- fold small leading repeat factors into the block ---------------------
    blk_bytes = base
    for c in chunks:
        blk_bytes *= c
    fold = set()
    fold_prod = 1
    for d in range(n_lead - 1, -1, -1):
        md = lead_mults[d]
        if md == 1:
            continue
        if blk_bytes * md > target:
            continue
        if fold_prod * md > _MAX_FOLD_COPIES:
            continue
        if fold_prod * md * m_t > _MAX_STORES_PER_STEP:
            continue
        fold.add(d)
        fold_prod *= md
        blk_bytes *= md

    # --- grid: data splits (outer) then copy axes (inner => input stays put) --
    grid_axes = []
    for d in range(n_lead):
        if chunks[d] < lead_sizes[d]:
            grid_axes.append(("lsplit", d, lead_sizes[d] // chunks[d]))
    if c_blk < c_trail:
        grid_axes.append(("csplit", -1, c_trail // c_blk))
    for d in range(n_lead):
        if lead_mults[d] > 1 and d not in fold:
            grid_axes.append(("lcopy", d, lead_mults[d]))
    gpos = {(k, d): i for i, (k, d, _) in enumerate(grid_axes)}
    grid = tuple(sz for _, _, sz in grid_axes) or (1,)

    # --- output layout handed to pallas_call ----------------------------------
    # Row-major interleaving (m_d, s_d) per repeated leading dim and (m_t, C)
    # for the trailing part reshapes to the torch output for free.
    out_arr_shape, out_block_shape, out_plan, kernel_axes = [], [], [], []
    for d in range(n_lead):
        md, sd, cd = lead_mults[d], lead_sizes[d], chunks[d]
        if md > 1:
            out_arr_shape.append(md)
            if d in fold:
                out_block_shape.append(md)
                out_plan.append(None)
                kernel_axes.append(("fold", d))
            else:
                out_block_shape.append(None)  # squeezed; grid index picks copy
                out_plan.append(gpos[("lcopy", d)])
        out_arr_shape.append(sd)
        out_block_shape.append(cd)
        out_plan.append(gpos[("lsplit", d)] if cd < sd else None)
        kernel_axes.append(("data", d))
    out_arr_shape.append(m_t)
    out_block_shape.append(m_t)
    out_plan.append(None)
    kernel_axes.append(("trail", -1))
    out_arr_shape.append(c_trail)
    out_block_shape.append(c_blk)
    out_plan.append(gpos[("csplit", -1)] if c_blk < c_trail else None)
    kernel_axes.append(("data", -1))

    in_block_shape = tuple(chunks) + (c_blk,)
    in_plan = [gpos[("lsplit", d)] if chunks[d] < lead_sizes[d] else None
               for d in range(n_lead)]
    in_plan.append(gpos[("csplit", -1)] if c_blk < c_trail else None)

    def _index_map(plan):
        def imap(*g):
            return tuple(0 if p is None else g[p] for p in plan)
        return imap

    # --- VMEM accounting (double-buffered in/out blocks) -----------------------
    out_block_bytes = itemsize * m_t * c_blk * fold_prod
    in_block_bytes = itemsize * c_blk
    for c in chunks:
        out_block_bytes *= c
        in_block_bytes *= c
    vmem_needed = 2 * (out_block_bytes + in_block_bytes) + (1 << 20)
    if vmem_needed > int(0.85 * vmem_cap):
        # TODO(synk): dims that cannot be split to fit VMEM (huge prime extents
        # etc.); keep them on XLA rather than risking a VMEM OOM.
        return jnp.tile(x, tuple(m))
    vmem_limit = min(int(0.85 * vmem_cap), max(vmem_needed, 32 * 1024 * 1024))

    fold_dims = tuple((d, lead_mults[d]) for d in sorted(fold))
    kernel = _make_repeat_kernel(tuple(kernel_axes), fold_dims, m_t)

    try:
        cost = pl.CostEstimate(
            flops=0,
            transcendentals=0,
            bytes_accessed=int(x_k.size * itemsize + out_bytes),
        )
    except Exception:
        cost = None

    out = pl.pallas_call(
        kernel,
        out_shape=jax.ShapeDtypeStruct(tuple(out_arr_shape), x.dtype),
        grid_spec=pltpu.PrefetchScalarGridSpec(
            num_scalar_prefetch=0,
            grid=grid,
            in_specs=[pl.BlockSpec(in_block_shape, _index_map(in_plan))],
            out_specs=pl.BlockSpec(tuple(out_block_shape), _index_map(out_plan)),
        ),
        compiler_params=pltpu.CompilerParams(
            dimension_semantics=("parallel",) * len(grid),
            vmem_limit_bytes=int(vmem_limit),
        ),
        cost_estimate=cost,
    )(x_k)

    return out.reshape(out_shape)


def repeat_pallas(x, multiples, target_block_bytes=None):
    """Equivalent of torch.Tensor.repeat(multiples) (aten.repeat.default)."""
    return _repeat_impl(x, tuple(int(v) for v in multiples),
                        target_block_bytes=target_block_bytes)


class Repeat:
    """Mirror of the PyTorch module: Repeat(multiples)(x) == x.repeat(multiples)."""

    def __init__(self, multiples):
        self.multiples = tuple(int(v) for v in multiples)

    def __call__(self, x):
        return repeat_pallas(x, self.multiples)


if __name__ == "__main__":
    key = jax.random.PRNGKey(0)
    x = jax.random.normal(key, (2, 4, 16, 16), dtype=jnp.float32)
    multiples = (2, 2, 2, 2)  # -> (4, 8, 32, 32)

    mod = Repeat(multiples)
    out = jax.block_until_ready(mod(x))
    ref = jnp.tile(x, multiples)
    assert out.shape == ref.shape, (out.shape, ref.shape)
    assert out.dtype == ref.dtype
    assert bool(jnp.array_equal(out, ref)), "Pallas repeat mismatch vs jnp.tile"

    # Extra configs: leading-only repeat (copy-major / (R,L) path), interior
    # repeats (lane-dense trailing merge), rank promotion, single trailing
    # repeat (masked-minor path), and a forced multi-step parallel grid.
    x2 = jax.random.normal(jax.random.PRNGKey(1), (2, 4, 16, 16), dtype=jnp.float32)
    for mult in [(3, 1, 1, 1), (1, 2, 2, 1), (2, 1, 2, 1, 1), (1, 1, 1, 2)]:
        o = jax.block_until_ready(repeat_pallas(x2, mult))
        r = jnp.tile(x2, mult)
        assert o.shape == r.shape and bool(jnp.array_equal(o, r)), mult

    o = jax.block_until_ready(
        repeat_pallas(x, multiples, target_block_bytes=16 * 1024)
    )
    assert bool(jnp.array_equal(o, ref)), "grid path mismatch"

    print("KERNEL_OK")
</pallas_src>

<mosaic_0001>
module attributes {stable_mosaic.version = 11 : i64} {
  func.func @kernel(%arg0: i32, %arg1: memref<2x4x512xf32, #tpu.memory_space<vmem>>, %arg2: memref<2x2x2x4x2x512xf32, #tpu.memory_space<vmem>>) attributes {dimension_semantics = [#tpu.dimension_semantics<parallel>], iteration_bounds = array<i64: 1>, scalar_prefetch = 0 : i64, scratch_operands = 0 : i64, tpu.core_type = #tpu.core_type<tc>, window_params = [{pipeline_mode = #tpu.pipeline_mode<synchronous>, transform_indices = @transform_0, window_bounds = array<i64: 2, 4, 512>}, {pipeline_mode = #tpu.pipeline_mode<synchronous>, transform_indices = @transform_1, window_bounds = array<i64: 2, 2, 2, 4, 2, 512>}]} {
    %c0 = arith.constant 0 : index
    %c0_0 = arith.constant 0 : index
    %c0_1 = arith.constant 0 : index
    %0 = vector.load %arg1[%c0, %c0_0, %c0_1] : memref<2x4x512xf32, #tpu.memory_space<vmem>>, vector<2x4x512xf32>
    %c0_2 = arith.constant 0 : index
    %c0_3 = arith.constant 0 : index
    %c0_4 = arith.constant 0 : index
    %c0_5 = arith.constant 0 : index
    %c0_6 = arith.constant 0 : index
    %c0_7 = arith.constant 0 : index
    %1 = vector.load %arg2[%c0_2, %c0_3, %c0_4, %c0_5, %c0_6, %c0_7] : memref<2x2x2x4x2x512xf32, #tpu.memory_space<vmem>>, vector<1x2x1x4x1x512xf32>
    %2 = vector.shape_cast %1 : vector<1x2x1x4x1x512xf32> to vector<2x4x512xf32>
    %3 = vector.shape_cast %0 : vector<2x4x512xf32> to vector<1x2x1x4x1x512xf32>
    tpu.vector_store %arg2[%c0_2, %c0_3, %c0_4, %c0_5, %c0_6, %c0_7], %3 {strides = array<i32>} : memref<2x2x2x4x2x512xf32, #tpu.memory_space<vmem>>, vector<1x2x1x4x1x512xf32>,
    %c0_8 = arith.constant 0 : index
    %c0_9 = arith.constant 0 : index
    %c0_10 = arith.constant 0 : index
    %c0_11 = arith.constant 0 : index
    %c1 = arith.constant 1 : index
    %c0_12 = arith.constant 0 : index
    %4 = vector.load %arg2[%c0_8, %c0_9, %c0_10, %c0_11, %c1, %c0_12] : memref<2x2x2x4x2x512xf32, #tpu.memory_space<vmem>>, vector<1x2x1x4x1x512xf32>
    %5 = vector.shape_cast %4 : vector<1x2x1x4x1x512xf32> to vector<2x4x512xf32>
    %6 = vector.shape_cast %0 : vector<2x4x512xf32> to vector<1x2x1x4x1x512xf32>
    tpu.vector_store %arg2[%c0_8, %c0_9, %c0_10, %c0_11, %c1, %c0_12], %6 {strides = array<i32>} : memref<2x2x2x4x2x512xf32, #tpu.memory_space<vmem>>, vector<1x2x1x4x1x512xf32>,
    %c0_13 = arith.constant 0 : index
    %c0_14 = arith.constant 0 : index
    %c1_15 = arith.constant 1 : index
    %c0_16 = arith.constant 0 : index
    %c0_17 = arith.constant 0 : index
    %c0_18 = arith.constant 0 : index
    %7 = vector.load %arg2[%c0_13, %c0_14, %c1_15, %c0_16, %c0_17, %c0_18] : memref<2x2x2x4x2x512xf32, #tpu.memory_space<vmem>>, vector<1x2x1x4x1x512xf32>
    %8 = vector.shape_cast %7 : vector<1x2x1x4x1x512xf32> to vector<2x4x512xf32>
    %9 = vector.shape_cast %0 : vector<2x4x512xf32> to vector<1x2x1x4x1x512xf32>
    tpu.vector_store %arg2[%c0_13, %c0_14, %c1_15, %c0_16, %c0_17, %c0_18], %9 {strides = array<i32>} : memref<2x2x2x4x2x512xf32, #tpu.memory_space<vmem>>, vector<1x2x1x4x1x512xf32>,
    %c0_19 = arith.constant 0 : index
    %c0_20 = arith.constant 0 : index
    %c1_21 = arith.constant 1 : index
    %c0_22 = arith.constant 0 : index
    %c1_23 = arith.constant 1 : index
    %c0_24 = arith.constant 0 : index
    %10 = vector.load %arg2[%c0_19, %c0_20, %c1_21, %c0_22, %c1_23, %c0_24] : memref<2x2x2x4x2x512xf32, #tpu.memory_space<vmem>>, vector<1x2x1x4x1x512xf32>
    %11 = vector.shape_cast %10 : vector<1x2x1x4x1x512xf32> to vector<2x4x512xf32>
    %12 = vector.shape_cast %0 : vector<2x4x512xf32> to vector<1x2x1x4x1x512xf32>
    tpu.vector_store %arg2[%c0_19, %c0_20, %c1_21, %c0_22, %c1_23, %c0_24], %12 {strides = array<i32>} : memref<2x2x2x4x2x512xf32, #tpu.memory_space<vmem>>, vector<1x2x1x4x1x512xf32>,
    %c1_25 = arith.constant 1 : index
    %c0_26 = arith.constant 0 : index
    %c0_27 = arith.constant 0 : index
    %c0_28 = arith.constant 0 : index
    %c0_29 = arith.constant 0 : index
    %c0_30 = arith.constant 0 : index
    %13 = vector.load %arg2[%c1_25, %c0_26, %c0_27, %c0_28, %c0_29, %c0_30] : memref<2x2x2x4x2x512xf32, #tpu.memory_space<vmem>>, vector<1x2x1x4x1x512xf32>
    %14 = vector.shape_cast %13 : vector<1x2x1x4x1x512xf32> to vector<2x4x512xf32>
    %15 = vector.shape_cast %0 : vector<2x4x512xf32> to vector<1x2x1x4x1x512xf32>
    tpu.vector_store %arg2[%c1_25, %c0_26, %c0_27, %c0_28, %c0_29, %c0_30], %15 {strides = array<i32>} : memref<2x2x2x4x2x512xf32, #tpu.memory_space<vmem>>, vector<1x2x1x4x1x512xf32>,
    %c1_31 = arith.constant 1 : index
    %c0_32 = arith.constant 0 : index
    %c0_33 = arith.constant 0 : index
    %c0_34 = arith.constant 0 : index
    %c1_35 = arith.constant 1 : index
    %c0_36 = arith.constant 0 : index
    %16 = vector.load %arg2[%c1_31, %c0_32, %c0_33, %c0_34, %c1_35, %c0_36] : memref<2x2x2x4x2x512xf32, #tpu.memory_space<vmem>>, vector<1x2x1x4x1x512xf32>
    %17 = vector.shape_cast %16 : vector<1x2x1x4x1x512xf32> to vector<2x4x512xf32>
    %18 = vector.shape_cast %0 : vector<2x4x512xf32> to vector<1x2x1x4x1x512xf32>
    tpu.vector_store %arg2[%c1_31, %c0_32, %c0_33, %c0_34, %c1_35, %c0_36], %18 {strides = array<i32>} : memref<2x2x2x4x2x512xf32, #tpu.memory_space<vmem>>, vector<1x2x1x4x1x512xf32>,
    %c1_37 = arith.constant 1 : index
    %c0_38 = arith.constant 0 : index
    %c1_39 = arith.constant 1 : index
    %c0_40 = arith.constant 0 : index
    %c0_41 = arith.constant 0 : index
    %c0_42 = arith.constant 0 : index
    %19 = vector.load %arg2[%c1_37, %c0_38, %c1_39, %c0_40, %c0_41, %c0_42] : memref<2x2x2x4x2x512xf32, #tpu.memory_space<vmem>>, vector<1x2x1x4x1x512xf32>
    %20 = vector.shape_cast %19 : vector<1x2x1x4x1x512xf32> to vector<2x4x512xf32>
    %21 = vector.shape_cast %0 : vector<2x4x512xf32> to vector<1x2x1x4x1x512xf32>
    tpu.vector_store %arg2[%c1_37, %c0_38, %c1_39, %c0_40, %c0_41, %c0_42], %21 {strides = array<i32>} : memref<2x2x2x4x2x512xf32, #tpu.memory_space<vmem>>, vector<1x2x1x4x1x512xf32>,
    %c1_43 = arith.constant 1 : index
    %c0_44 = arith.constant 0 : index
    %c1_45 = arith.constant 1 : index
    %c0_46 = arith.constant 0 : index
    %c1_47 = arith.constant 1 : index
    %c0_48 = arith.constant 0 : index
    %22 = vector.load %arg2[%c1_43, %c0_44, %c1_45, %c0_46, %c1_47, %c0_48] : memref<2x2x2x4x2x512xf32, #tpu.memory_space<vmem>>, vector<1x2x1x4x1x512xf32>
    %23 = vector.shape_cast %22 : vector<1x2x1x4x1x512xf32> to vector<2x4x512xf32>
    %24 = vector.shape_cast %0 : vector<2x4x512xf32> to vector<1x2x1x4x1x512xf32>
    tpu.vector_store %arg2[%c1_43, %c0_44, %c1_45, %c0_46, %c1_47, %c0_48], %24 {strides = array<i32>} : memref<2x2x2x4x2x512xf32, #tpu.memory_space<vmem>>, vector<1x2x1x4x1x512xf32>,
    return
  }
  func.func @transform_0(%arg0: i32) -> (i32, i32, i32) {
    %c0_i32 = arith.constant 0 : i32
    %c0_i32_0 = arith.constant 0 : i32
    %c0_i32_1 = arith.constant 0 : i32
    %c0_i32_2 = arith.constant 0 : i32
    return %c0_i32, %c0_i32_0, %c0_i32_1 : i32, i32, i32
  }
  func.func @transform_1(%arg0: i32) -> (i32, i32, i32, i32, i32, i32) {
    %c0_i32 = arith.constant 0 : i32
    %c0_i32_0 = arith.constant 0 : i32
    %c0_i32_1 = arith.constant 0 : i32
    %c0_i32_2 = arith.constant 0 : i32
    %c0_i32_3 = arith.constant 0 : i32
    %c0_i32_4 = arith.constant 0 : i32
    %c0_i32_5 = arith.constant 0 : i32
    return %c0_i32, %c0_i32_0, %c0_i32_1, %c0_i32_2, %c0_i32_3, %c0_i32_4 : i32, i32, i32, i32, i32, i32
  }
}

</mosaic_0001>

<bundles_post_ra>
// kernel: tile.9
= control target key start
LH: loop header
LB: loop body
LE: loop exit
PB: predicated region body
PF: predicated region fallthrough
CT: control target
= control target key end

     0   :  { %vm643_vm0 = vcmask 1041409   ;;  %vm647_vm1 = vcmask 1042434   ;;  %vm651_vm2 = vcmask 1043459   ;;  %vm655_vm3 = vcmask 1044484   ;;  %s2127_s8 = smov 112   ;;  %s2128_s13 = smov 96   ;;  %s2844_s0 = inlined_call_operand.vmem [shape: f32[2,4,16,2,16], index: 0, kind: input, shape index: {}]   ;;  %s2845_s1 = inlined_call_operand.vmem [shape: f32[2,4,512], index: 1, kind: output, shape index: {}]  }
   0x1   :  { %v2058_v0 = vld [vmem:[%s2844_s0 + $0x6e] sm:$0x3]  ;;  %v2062_v1 = vld [vmem:[%s2844_s0 + $0x66] sm:$0x3]  ;;  %v2050_v8 = vld [vmem:[%s2844_s0 + $0x7e] sm:$0x3] }
   0x2   :  { %v2074_v2 = vld [vmem:[%s2844_s0 + $0x4e] sm:$0x3]  ;;  %368 = vst [vmem:[#allocation1 + $0x1b8] sm:$0x3] %v2058_v0  ;;  %388 = vst [vmem:[#allocation1 + $0x198] sm:$0x3] %v2062_v1 }
   0x3   :  { %448 = vst [vmem:[#allocation1 + $0x138] sm:$0x3] %v2074_v2  ;;  %v2078_v3 = vld [vmem:[%s2844_s0 + $0x46] sm:$0x3]  ;;  %v2090_v4 = vld [vmem:[%s2844_s0 + $0x2e] sm:$0x3] }
   0x4   :  { %v2094_v5 = vld [vmem:[%s2844_s0 + $0x26] sm:$0x3]  ;;  %468 = vst [vmem:[#allocation1 + $0x118] sm:$0x3] %v2078_v3  ;;  %528 = vst [vmem:[#allocation1 + $0xb8] sm:$0x3] %v2090_v4 }
   0x5   :  { %548 = vst [vmem:[#allocation1 + $0x98] sm:$0x3] %v2094_v5  ;;  %v2106_v6 = vld [vmem:[%s2844_s0 + $0xe] sm:$0x3]  ;;  %v2110_v7 = vld [vmem:[%s2844_s0 + $0x6] sm:$0x3] }
   0x6   :  { %608 = vst [vmem:[#allocation1 + $0x38] sm:$0x3] %v2106_v6  ;;  %628 = vst [vmem:[#allocation1 + $0x18] sm:$0x3] %v2110_v7  ;;  %v2054_v9 = vld [vmem:[%s2844_s0 + $0x76] sm:$0x3] }
   0x7   :  { %328 = vst [vmem:[#allocation1 + $0x1f8] sm:$0x3] %v2050_v8  ;;  %348 = vst [vmem:[#allocation1 + $0x1d8] sm:$0x3] %v2054_v9  ;;  %v2066_v10 = vld [vmem:[%s2844_s0 + $0x5e] sm:$0x3] }
   0x8   :  { %v2070_v11 = vld [vmem:[%s2844_s0 + $0x56] sm:$0x3]  ;;  %v2082_v12 = vld [vmem:[%s2844_s0 + $0x3e] sm:$0x3]  ;;  %408 = vst [vmem:[#allocation1 + $0x178] sm:$0x3] %v2066_v10 }
   0x9   :  { %428 = vst [vmem:[#allocation1 + $0x158] sm:$0x3] %v2070_v11  ;;  %488 = vst [vmem:[#allocation1 + $0xf8] sm:$0x3] %v2082_v12  ;;  %v2086_v13 = vld [vmem:[%s2844_s0 + $0x36] sm:$0x3] }
   0xa   :  { %v2098_v14 = vld [vmem:[%s2844_s0 + $0x1e] sm:$0x3]  ;;  %v2102_v15 = vld [vmem:[%s2844_s0 + $0x16] sm:$0x3]  ;;  %508 = vst [vmem:[#allocation1 + $0xd8] sm:$0x3] %v2086_v13 }
   0xb   :  { %568 = vst [vmem:[#allocation1 + $0x78] sm:$0x3] %v2098_v14  ;;  %588 = vst [vmem:[#allocation1 + $0x58] sm:$0x3] %v2102_v15  ;;  %v1994_v16 = vld [vmem:[%s2844_s0 + $0xee] sm:$0x3] }
   0xc   :  { %v1998_v17 = vld [vmem:[%s2844_s0 + $0xe6] sm:$0x3]  ;;  %v2010_v18 = vld [vmem:[%s2844_s0 + $0xce] sm:$0x3]  ;;  %vm659_vm4 = vcmask 1045509   ;;  %vm663_vm5 = vcmask 1046534  }
   0xd   :  { %48 = vst [vmem:[#allocation1 + $0x3b8] sm:$0x3] %v1994_v16  ;;  %68 = vst [vmem:[#allocation1 + $0x398] sm:$0x3] %v1998_v17  ;;  %v781_v19 = vld [vmem:[#allocation1 + $0x98] sm:$0x2]  }
   0xe   :  { %128 = vst [vmem:[#allocation1 + $0x338] sm:$0x3] %v2010_v18  ;;  %v785_v20 = vld [vmem:[#allocation1 + $0x117] sm:$0x4]   ;;  %v2014_v24 = vld [vmem:[%s2844_s0 + $0xc6] sm:$0x3] }
   0xf   :  { %v789_v21 = vld [vmem:[#allocation1 + $0x196] sm:$0x8]   ;;  %148 = vst [vmem:[#allocation1 + $0x318] sm:$0x3] %v2014_v24  ;;  %v2026_v26 = vld [vmem:[%s2844_s0 + $0xae] sm:$0x3] }
  0x10   :  { %v779_v22 = vld [vmem:[#allocation1 + $0x19] sm:$0x1]   ;;  %v2030_v27 = vld [vmem:[%s2844_s0 + $0xa6] sm:$0x3]  ;;  %v2042_v28 = vld [vmem:[%s2844_s0 + $0x8e] sm:$0x3] }
  0x11   :  { %v793_v23 = vld [vmem:[#allocation1 + $0x35] sm:$0x10]   ;;  %v783_v25 = vsel %vm643_vm0, %v781_v19, %v779_v22  ;;  %vm667_vm6 = vcmask 1047559   ;;  %208 = vst [vmem:[#allocation1 + $0x2b8] sm:$0x3] %v2026_v26  ;;  %s2129_s19 = smov 80  }
  0x12   :  { %v787_v29 = vsel %vm647_vm1, %v785_v20, %v783_v25  ;;  %v797_v30 = vld [vmem:[#allocation1 + $0xb4] sm:$0x20]   ;;  %228 = vst [vmem:[#allocation1 + $0x298] sm:$0x3] %v2030_v27  ;;  %288 = vst [vmem:[#allocation1 + $0x238] sm:$0x3] %v2042_v28 }
  0x13   :  { %v2046_v31 = vld [vmem:[%s2844_s0 + $0x86] sm:$0x3]  ;;  %v791_v32 = vsel %vm651_vm2, %v789_v21, %v787_v29  ;;  %v801_v33 = vld [vmem:[#allocation1 + $0x133] sm:$0x40]   ;;  %v1986_v48 = vld [vmem:[%s2844_s0 + $0xfe] sm:$0x3] }
  0x14   :  { %v805_v34 = vld [vmem:[#allocation1 + $0x1b2] sm:$0x80]   ;;  %308 = vst [vmem:[#allocation1 + $0x218] sm:$0x3] %v2046_v31  ;;  %v795_v36 = vsel %vm655_vm3, %v793_v23, %v791_v32  ;;  %v1990_v49 = vld [vmem:[%s2844_s0 + $0xf6] sm:$0x3] }
  0x15   :  { %v858_v35 = vld [vmem:[#allocation1 + $0x157] sm:$0x4]   ;;  %v799_v40 = vsel %vm659_vm4, %v797_v30, %v795_v36  ;;  %v2002_v50 = vld [vmem:[%s2844_s0 + $0xde] sm:$0x3]  ;;  %8 = vst [vmem:[#allocation1 + $0x3f8] sm:$0x3] %v1986_v48 }
  0x16   :  { %v852_v37 = vld [vmem:[#allocation1 + $0x59] sm:$0x1]   ;;  %v803_v45 = vsel %vm663_vm5, %v801_v33, %v799_v40  ;;  %28 = vst [vmem:[#allocation1 + $0x3d8] sm:$0x3] %v1990_v49  ;;  %88 = vst [vmem:[#allocation1 + $0x378] sm:$0x3] %v2002_v50 }
  0x17   :  { %v854_v38 = vld [vmem:[#allocation1 + $0xd8] sm:$0x2]   ;;  %v807_v51 = vsel %vm667_vm6, %v805_v34, %v803_v45  ;;  %v2006_v53 = vld [vmem:[%s2844_s0 + $0xd6] sm:$0x3]  ;;  %v2018_v54 = vld [vmem:[%s2844_s0 + $0xbe] sm:$0x3] }
  0x18   :  { %v862_v39 = vld [vmem:[#allocation1 + $0x1d6] sm:$0x8]   ;;  %v856_v41 = vsel %vm643_vm0, %v854_v38, %v852_v37  ;;  %v2022_v55 = vld [vmem:[%s2844_s0 + $0xb6] sm:$0x3]  ;;  %808 = vrot.lane.b32.xlu0 %v807_v51, %s2127_s8  ;;  %108 = vst [vmem:[#allocation1 + $0x358] sm:$0x3] %v2006_v53 }
  0x19   :  { %v866_v42 = vld [vmem:[#allocation1 + $0x75] sm:$0x10]   ;;  %v860_v46 = vsel %vm647_vm1, %v858_v35, %v856_v41  ;;  %168 = vst [vmem:[#allocation1 + $0x2f8] sm:$0x3] %v2018_v54  ;;  %188 = vst [vmem:[#allocation1 + $0x2d8] sm:$0x3] %v2022_v55 }
  0x1a   :  { %v870_v43 = vld [vmem:[#allocation1 + $0xf4] sm:$0x20]   ;;  %v864_v52 = vsel %vm651_vm2, %v862_v39, %v860_v46  ;;  %v2034_v58 = vld [vmem:[%s2844_s0 + $0x9e] sm:$0x3]  ;;  %v2038_v59 = vld [vmem:[%s2844_s0 + $0x96] sm:$0x3] }
  0x1b   :  { %v874_v44 = vld [vmem:[#allocation1 + $0x173] sm:$0x40]   ;;  %v868_v56 = vsel %vm655_vm3, %v866_v42, %v864_v52  ;;  %248 = vst [vmem:[#allocation1 + $0x278] sm:$0x3] %v2034_v58  ;;  %268 = vst [vmem:[#allocation1 + $0x258] sm:$0x3] %v2038_v59 }
  0x1c   :  { %v878_v47 = vld [vmem:[#allocation1 + $0x1f2] sm:$0x80]   ;;  %v872_v60 = vsel %vm659_vm4, %v870_v43, %v868_v56  ;;  %v926_v2 = vld [vmem:[#allocation1 + $0x18] sm:$0x1]   ;;  %s2130_s22 = smov 64   ;;  %s2131_s26 = smov 48  }
  0x1d   :  { %v825_v57 = vld [vmem:[#allocation1 + $0x396] sm:$0x8]   ;;  %v876_v0 = vsel %vm663_vm5, %v874_v44, %v872_v60  ;;  %v928_v3 = vld [vmem:[#allocation1 + $0x97] sm:$0x2]   ;;  %s2132_s2 = smov 32   ;;  %s2133_s24 = smov 16  }
  0x1e   :  { %v817_v61 = vld [vmem:[#allocation1 + $0x298] sm:$0x2]   ;;  %v880_v4 = vsel %vm667_vm6, %v878_v47, %v876_v0  ;;  %v930_v7 = vsel %vm643_vm0, %v928_v3, %v926_v2  ;;  %v932_v8 = vld [vmem:[#allocation1 + $0x116] sm:$0x4]   ;;  %vm669_vm7 = vcmask 130048   ;;  %vm810_vm8 = vcmask 1048448  }
  0x1f   :  { %v821_v62 = vld [vmem:[#allocation1 + $0x317] sm:$0x4]   ;;  %v936_v9 = vld [vmem:[#allocation1 + $0x195] sm:$0x8]   ;;  %881 = vrot.lane.b32.xlu1 %v880_v4, %s2127_s8  ;;  %v934_v13 = vsel %vm647_vm1, %v932_v8, %v930_v7  ;;  %vm957_vm9 = vcmask 917248   ;;  %vm1104_vm10 = vcmask 786048  }
  0x20   :  { %v829_v63 = vld [vmem:[#allocation1 + $0x235] sm:$0x10]   ;;  %v940_v10 = vld [vmem:[#allocation1 + $0x34] sm:$0x10]   ;;  %v938_v17 = vsel %vm651_vm2, %v936_v9, %v934_v13  ;;  %vm1251_vm11 = vcmask 654848   ;;  %vm1398_vm12 = vcmask 523648  }
  0x21   :  { %v815_v1 = vld [vmem:[#allocation1 + $0x219] sm:$0x1]   ;;  %v944_v14 = vld [vmem:[#allocation1 + $0xb3] sm:$0x20]   ;;  %v942_v23 = vsel %vm655_vm3, %v940_v10, %v938_v17  ;;  %vm1545_vm13 = vcmask 392448   ;;  %vm1692_vm14 = vcmask 261248  }
  0x22   :  { %v819_v5 = vsel %vm643_vm0, %v817_v61, %v815_v1  ;;  %v837_v6 = vld [vmem:[#allocation1 + $0x333] sm:$0x40]   ;;  %v948_v15 = vld [vmem:[#allocation1 + $0x132] sm:$0x40]   ;;  %v946_v30 = vsel %vm659_vm4, %v944_v14, %v942_v23 }
  0x23   :  { %v823_v11 = vsel %vm647_vm1, %v821_v62, %v819_v5  ;;  %v833_v12 = vld [vmem:[#allocation1 + $0x2b4] sm:$0x20]   ;;  %v962_v18 = vld [vmem:[#allocation1 + $0x218] sm:$0x1]   ;;  %v950_v35 = vsel %vm663_vm5, %v948_v15, %v946_v30  ;;  %v2059_v15 = vld [vmem:[%s2844_s0 + $0x6c] sm:$0x3] }
  0x24   :  { %v827_v16 = vsel %vm651_vm2, %v825_v57, %v823_v11  ;;  %v964_v19 = vld [vmem:[#allocation1 + $0x297] sm:$0x2]   ;;  %v841_v22 = vld [vmem:[#allocation1 + $0x3b2] sm:$0x80]   ;;  %373 = vst [vmem:[#allocation1 + $0x1b0] sm:$0x3] %v2059_v15 }
  0x25   :  { %v968_v20 = vld [vmem:[#allocation1 + $0x316] sm:$0x4]   ;;  %v831_v21 = vsel %vm655_vm3, %v829_v63, %v827_v16  ;;  %v966_v25 = vsel %vm643_vm0, %v964_v19, %v962_v18  ;;  %v891_v27 = vld [vmem:[#allocation1 + $0x2d8] sm:$0x2]   ;;  %v2063_v19 = vld [vmem:[%s2844_s0 + $0x64] sm:$0x3] }
  0x26   :  { %v952_v24 = vld [vmem:[#allocation1 + $0x1b1] sm:$0x80]   ;;  %v835_v26 = vsel %vm659_vm4, %v833_v12, %v831_v21  ;;  %v895_v28 = vld [vmem:[#allocation1 + $0x357] sm:$0x4]   ;;  %v970_v31 = vsel %vm647_vm1, %v968_v20, %v966_v25  ;;  %v2075_v20 = vld [vmem:[%s2844_s0 + $0x4c] sm:$0x3] }
  0x27   :  { %v899_v29 = vld [vmem:[#allocation1 + $0x3d6] sm:$0x8]   ;;  %v839_v32 = vsel %vm663_vm5, %v837_v6, %v835_v26  ;;  %v972_v36 = vld [vmem:[#allocation1 + $0x395] sm:$0x8]   ;;  %v954_v51 = vsel %vm667_vm6, %v952_v24, %v950_v35  ;;  %v2079_v21 = vld [vmem:[%s2844_s0 + $0x44] sm:$0x3] }
  0x28   :  { %v889_v33 = vld [vmem:[#allocation1 + $0x259] sm:$0x1]   ;;  %v843_v37 = vsel %vm667_vm6, %v841_v22, %v839_v32  ;;  %v974_v41 = vsel %vm651_vm2, %v972_v36, %v970_v31  ;;  %v976_v42 = vld [vmem:[#allocation1 + $0x234] sm:$0x10]   ;;  %393 = vst [vmem:[#allocation1 + $0x190] sm:$0x3] %v2063_v19 }
  0x29   :  { %v907_v34 = vld [vmem:[#allocation1 + $0x2f4] sm:$0x20]   ;;  %v893_v38 = vsel %vm643_vm0, %v891_v27, %v889_v33  ;;  %v980_v43 = vld [vmem:[#allocation1 + $0x2b3] sm:$0x20]   ;;  %844 = vrot.lane.b32.xlu0 %v843_v37, %s2127_s8  ;;  %v978_v46 = vsel %vm655_vm3, %v976_v42, %v974_v41  ;;  %453 = vst [vmem:[#allocation1 + $0x130] sm:$0x3] %v2075_v20 }
  0x2a   :  { %v903_v39 = vld [vmem:[#allocation1 + $0x275] sm:$0x10]   ;;  %v897_v44 = vsel %vm647_vm1, %v895_v28, %v893_v38  ;;  %v984_v47 = vld [vmem:[#allocation1 + $0x332] sm:$0x40]   ;;  %v982_v52 = vsel %vm659_vm4, %v980_v43, %v978_v46  ;;  %473 = vst [vmem:[#allocation1 + $0x110] sm:$0x3] %v2079_v21 }
  0x2b   :  { %v911_v40 = vld [vmem:[#allocation1 + $0x373] sm:$0x40]   ;;  %v999_v48 = vld [vmem:[#allocation1 + $0x58] sm:$0x1]   ;;  %v901_v50 = vsel %vm651_vm2, %v899_v29, %v897_v44  ;;  %v986_v4 = vsel %vm663_vm5, %v984_v47, %v982_v52  ;;  %v2091_v25 = vld [vmem:[%s2844_s0 + $0x2c] sm:$0x3] }
  0x2c   :  { %v915_v45 = vld [vmem:[#allocation1 + $0x3f2] sm:$0x80]   ;;  %v1001_v49 = vld [vmem:[#allocation1 + $0xd7] sm:$0x2]   ;;  %v905_v57 = vsel %vm655_vm3, %v903_v39, %v901_v50  ;;  %v2095_v26 = vld [vmem:[%s2844_s0 + $0x24] sm:$0x3] }
  0x2d   :  { %v1003_v53 = vsel %vm643_vm0, %v1001_v49, %v999_v48  ;;  %v1005_v54 = vld [vmem:[#allocation1 + $0x156] sm:$0x4]   ;;  %v909_v62 = vsel %vm659_vm4, %v907_v34, %v905_v57  ;;  %955 = vrot.lane.b32.xlu0 %v954_v51, %s2128_s13  ;;  %v2107_v27 = vld [vmem:[%s2844_s0 + $0xc] sm:$0x3]  ;;  %533 = vst [vmem:[#allocation1 + $0xb0] sm:$0x3] %v2091_v25 }
  0x2e   :  { %v1009_v55 = vld [vmem:[#allocation1 + $0x1d5] sm:$0x8]   ;;  %v1007_v59 = vsel %vm647_vm1, %v1005_v54, %v1003_v53  ;;  %v913_v3 = vsel %vm663_vm5, %v911_v40, %v909_v62  ;;  %553 = vst [vmem:[#allocation1 + $0x90] sm:$0x3] %v2095_v26  ;;  %613 = vst [vmem:[#allocation1 + $0x30] sm:$0x3] %v2107_v27 }
  0x2f   :  { %v1013_v56 = vld [vmem:[#allocation1 + $0x74] sm:$0x10]   ;;  %v1011_v63 = vsel %vm651_vm2, %v1009_v55, %v1007_v59  ;;  %v917_v10 = vsel %vm667_vm6, %v915_v45, %v913_v3  ;;  %v2111_v29 = vld [vmem:[%s2844_s0 + $0x4] sm:$0x3]  ;;  %v1995_v30 = vld [vmem:[%s2844_s0 + $0xec] sm:$0x3] }
  0x30   :  { %v988_v58 = vld [vmem:[#allocation1 + $0x3b1] sm:$0x80]   ;;  %v1015_v5 = vsel %vm655_vm3, %v1013_v56, %v1011_v63  ;;  %918 = vrot.lane.b32.xlu1 %v917_v10, %s2127_s8  ;;  %v1999_v31 = vld [vmem:[%s2844_s0 + $0xe4] sm:$0x3]  ;;  %633 = vst [vmem:[#allocation1 + $0x10] sm:$0x3] %v2111_v29 }
  0x31   :  { %v1017_v60 = vld [vmem:[#allocation1 + $0xf3] sm:$0x20]   ;;  %v990_v22 = vsel %vm667_vm6, %v988_v58, %v986_v4  ;;  %53 = vst [vmem:[#allocation1 + $0x3b0] sm:$0x3] %v1995_v30  ;;  %73 = vst [vmem:[#allocation1 + $0x390] sm:$0x3] %v1999_v31 }
  0x32   :  { %v1021_v61 = vld [vmem:[#allocation1 + $0x172] sm:$0x40]   ;;  %v1019_v11 = vsel %vm659_vm4, %v1017_v60, %v1015_v5  ;;  %v2011_v33 = vld [vmem:[%s2844_s0 + $0xcc] sm:$0x3]  ;;  %v2015_v34 = vld [vmem:[%s2844_s0 + $0xc4] sm:$0x3] }
  0x33   :  { %v1036_v0 = vld [vmem:[#allocation1 + $0x258] sm:$0x1]   ;;  %v1023_v16 = vsel %vm663_vm5, %v1021_v61, %v1019_v11  ;;  %v2027_v35 = vld [vmem:[%s2844_s0 + $0xac] sm:$0x3]  ;;  %133 = vst [vmem:[#allocation1 + $0x330] sm:$0x3] %v2011_v33 }
  0x34   :  { %v1038_v1 = vld [vmem:[#allocation1 + $0x2d7] sm:$0x2]   ;;  %991 = vrot.lane.b32.xlu1 %v990_v22, %s2128_s13  ;;  %153 = vst [vmem:[#allocation1 + $0x310] sm:$0x3] %v2015_v34  ;;  %213 = vst [vmem:[#allocation1 + $0x2b0] sm:$0x3] %v2027_v35 }
  0x35   :  { %v1042_v2 = vld [vmem:[#allocation1 + $0x356] sm:$0x4]   ;;  %v1040_v7 = vsel %vm643_vm0, %v1038_v1, %v1036_v0  ;;  %v2031_v36 = vld [vmem:[%s2844_s0 + $0xa4] sm:$0x3]  ;;  %v2043_v37 = vld [vmem:[%s2844_s0 + $0x8c] sm:$0x3] }
  0x36   :  { %v1025_v6 = vld [vmem:[#allocation1 + $0x1f1] sm:$0x80]   ;;  %v1044_v12 = vsel %vm647_vm1, %v1042_v2, %v1040_v7  ;;  %v2047_v38 = vld [vmem:[%s2844_s0 + $0x84] sm:$0x3]  ;;  %233 = vst [vmem:[#allocation1 + $0x290] sm:$0x3] %v2031_v36 }
  0x37   :  { %v1046_v8 = vld [vmem:[#allocation1 + $0x3d5] sm:$0x8]   ;;  %v1027_v23 = vsel %vm667_vm6, %v1025_v6, %v1023_v16  ;;  %293 = vst [vmem:[#allocation1 + $0x230] sm:$0x3] %v2043_v37  ;;  %313 = vst [vmem:[#allocation1 + $0x210] sm:$0x3] %v2047_v38 }
  0x38   :  { %v1050_v9 = vld [vmem:[#allocation1 + $0x274] sm:$0x10]   ;;  %v1048_v17 = vsel %vm651_vm2, %v1046_v8, %v1044_v12  ;;  %1028 = vrot.lane.b32.xlu0 %v1027_v23, %s2128_s13  ;;  %v2051_v40 = vld [vmem:[%s2844_s0 + $0x7c] sm:$0x3]  ;;  %v2055_v41 = vld [vmem:[%s2844_s0 + $0x74] sm:$0x3] }
  0x39   :  { %v1054_v13 = vld [vmem:[#allocation1 + $0x2f3] sm:$0x20]   ;;  %v1052_v24 = vsel %vm655_vm3, %v1050_v9, %v1048_v17  ;;  %v2067_v42 = vld [vmem:[%s2844_s0 + $0x5c] sm:$0x3]  ;;  %333 = vst [vmem:[#allocation1 + $0x1f0] sm:$0x3] %v2051_v40 }
  0x3a   :  { %v1058_v14 = vld [vmem:[#allocation1 + $0x372] sm:$0x40]   ;;  %v1056_v28 = vsel %vm659_vm4, %v1054_v13, %v1052_v24  ;;  %353 = vst [vmem:[#allocation1 + $0x1d0] sm:$0x3] %v2055_v41  ;;  %413 = vst [vmem:[#allocation1 + $0x170] sm:$0x3] %v2067_v42 }
  0x3b   :  { %v1062_v18 = vld [vmem:[#allocation1 + $0x3f1] sm:$0x80]   ;;  %v1060_v32 = vsel %vm663_vm5, %v1058_v14, %v1056_v28  ;;  %v2071_v43 = vld [vmem:[%s2844_s0 + $0x54] sm:$0x3]  ;;  %v2083_v44 = vld [vmem:[%s2844_s0 + $0x3c] sm:$0x3] }
  0x3c   :  { %v1064_v39 = vsel %vm667_vm6, %v1062_v18, %v1060_v32  ;;  %v2087_v45 = vld [vmem:[%s2844_s0 + $0x34] sm:$0x3]  ;;  %433 = vst [vmem:[#allocation1 + $0x150] sm:$0x3] %v2071_v43  ;;  %493 = vst [vmem:[#allocation1 + $0xf0] sm:$0x3] %v2083_v44 }
  0x3d   :  { %513 = vst [vmem:[#allocation1 + $0xd0] sm:$0x3] %v2087_v45  ;;  %v2099_v46 = vld [vmem:[%s2844_s0 + $0x1c] sm:$0x3]  ;;  %v2103_v47 = vld [vmem:[%s2844_s0 + $0x14] sm:$0x3]  ;;  %1065 = vrot.lane.b32.xlu1 %v1064_v39, %s2128_s13 }
  0x3e   :  { %573 = vst [vmem:[#allocation1 + $0x70] sm:$0x3] %v2099_v46  ;;  %593 = vst [vmem:[#allocation1 + $0x50] sm:$0x3] %v2103_v47  ;;  %v1075_v48 = vld [vmem:[#allocation1 + $0x90] sm:$0x2]  }
  0x3f   :  { %v1079_v49 = vld [vmem:[#allocation1 + $0x10f] sm:$0x4]   ;;  %v1987_v14 = vld [vmem:[%s2844_s0 + $0xfc] sm:$0x3]  ;;  %v1991_v19 = vld [vmem:[%s2844_s0 + $0xf4] sm:$0x3] }
  0x40   :  { %v1073_v50 = vld [vmem:[#allocation1 + $0x11] sm:$0x1]   ;;  %13 = vst [vmem:[#allocation1 + $0x3f0] sm:$0x3] %v1987_v14  ;;  %v2003_v20 = vld [vmem:[%s2844_s0 + $0xdc] sm:$0x3] }
  0x41   :  { %v1083_v51 = vld [vmem:[#allocation1 + $0x18e] sm:$0x8]   ;;  %v1077_v52 = vsel %vm643_vm0, %v1075_v48, %v1073_v50  ;;  %v2007_v21 = vld [vmem:[%s2844_s0 + $0xd4] sm:$0x3]  ;;  %33 = vst [vmem:[#allocation1 + $0x3d0] sm:$0x3] %v1991_v19 }
  0x42   :  { %v1087_v53 = vld [vmem:[#allocation1 + $0x2d] sm:$0x10]   ;;  %v1081_v57 = vsel %vm647_vm1, %v1079_v49, %v1077_v52  ;;  %93 = vst [vmem:[#allocation1 + $0x370] sm:$0x3] %v2003_v20  ;;  %113 = vst [vmem:[#allocation1 + $0x350] sm:$0x3] %v2007_v21 }
  0x43   :  { %v1091_v54 = vld [vmem:[#allocation1 + $0xac] sm:$0x20]   ;;  %v1085_v62 = vsel %vm651_vm2, %v1083_v51, %v1081_v57  ;;  %v2019_v26 = vld [vmem:[%s2844_s0 + $0xbc] sm:$0x3]  ;;  %v2023_v27 = vld [vmem:[%s2844_s0 + $0xb4] sm:$0x3] }
  0x44   :  { %v1095_v55 = vld [vmem:[#allocation1 + $0x12b] sm:$0x40]   ;;  %v1089_v3 = vsel %vm655_vm3, %v1087_v53, %v1085_v62  ;;  %v2035_v28 = vld [vmem:[%s2844_s0 + $0x9c] sm:$0x3]  ;;  %173 = vst [vmem:[#allocation1 + $0x2f0] sm:$0x3] %v2019_v26 }
  0x45   :  { %v1115_v56 = vld [vmem:[#allocation1 + $0x30f] sm:$0x4]   ;;  %v1093_v9 = vsel %vm659_vm4, %v1091_v54, %v1089_v3  ;;  %193 = vst [vmem:[#allocation1 + $0x2d0] sm:$0x3] %v2023_v27  ;;  %253 = vst [vmem:[#allocation1 + $0x270] sm:$0x3] %v2035_v28 }
  0x46   :  { %v1099_v58 = vld [vmem:[#allocation1 + $0x1aa] sm:$0x80]   ;;  %v1097_v15 = vsel %vm663_vm5, %v1095_v55, %v1093_v9  ;;  %v2039_v31 = vld [vmem:[%s2844_s0 + $0x94] sm:$0x3]  ;;  %v1220_v32 = vld [vmem:[#allocation1 + $0x10] sm:$0x1]  }
  0x47   :  { %v1109_v59 = vld [vmem:[#allocation1 + $0x211] sm:$0x1]   ;;  %v1101_v22 = vsel %vm667_vm6, %v1099_v58, %v1097_v15  ;;  %v1222_v33 = vld [vmem:[#allocation1 + $0x8f] sm:$0x2]   ;;  %273 = vst [vmem:[#allocation1 + $0x250] sm:$0x3] %v2039_v31 }
  0x48   :  { %v1111_v60 = vld [vmem:[#allocation1 + $0x290] sm:$0x2]   ;;  %1102 = vrot.lane.b32.xlu0 %v1101_v22, %s2129_s19  ;;  %v1224_v36 = vsel %vm643_vm0, %v1222_v33, %v1220_v32  ;;  %v1226_v37 = vld [vmem:[#allocation1 + $0x10e] sm:$0x4]  }
  0x49   :  { %v1119_v61 = vld [vmem:[#allocation1 + $0x38e] sm:$0x8]   ;;  %v1113_v63 = vsel %vm643_vm0, %v1111_v60, %v1109_v59  ;;  %v1230_v38 = vld [vmem:[#allocation1 + $0x18d] sm:$0x8]   ;;  %v1228_v41 = vsel %vm647_vm1, %v1226_v37, %v1224_v36 }
  0x4a   :  { %v1123_v0 = vld [vmem:[#allocation1 + $0x22d] sm:$0x10]   ;;  %v1117_v4 = vsel %vm647_vm1, %v1115_v56, %v1113_v63  ;;  %v1234_v39 = vld [vmem:[#allocation1 + $0x2c] sm:$0x10]   ;;  %v1232_v44 = vsel %vm651_vm2, %v1230_v38, %v1228_v41  ;;  %v2076_v41 = vld [vmem:[%s2844_s0 + $0x4a] sm:$0x3] }
  0x4b   :  { %v1127_v1 = vld [vmem:[#allocation1 + $0x2ac] sm:$0x20]   ;;  %v1121_v10 = vsel %vm651_vm2, %v1119_v61, %v1117_v4  ;;  %v1238_v42 = vld [vmem:[#allocation1 + $0xab] sm:$0x20]   ;;  %v1236_v49 = vsel %vm655_vm3, %v1234_v39, %v1232_v44  ;;  %v2060_v39 = vld [vmem:[%s2844_s0 + $0x6a] sm:$0x3] }
  0x4c   :  { %v1131_v2 = vld [vmem:[#allocation1 + $0x32b] sm:$0x40]   ;;  %v1125_v16 = vsel %vm655_vm3, %v1123_v0, %v1121_v10  ;;  %v1242_v45 = vld [vmem:[#allocation1 + $0x12a] sm:$0x40]   ;;  %v1240_v54 = vsel %vm659_vm4, %v1238_v42, %v1236_v49  ;;  %378 = vst [vmem:[#allocation1 + $0x1a8] sm:$0x3] %v2060_v39 }
  0x4d   :  { %v1135_v5 = vld [vmem:[#allocation1 + $0x3aa] sm:$0x80]   ;;  %v1129_v23 = vsel %vm659_vm4, %v1127_v1, %v1125_v16  ;;  %v1256_v46 = vld [vmem:[#allocation1 + $0x210] sm:$0x1]   ;;  %v1244_v57 = vsel %vm663_vm5, %v1242_v45, %v1240_v54  ;;  %458 = vst [vmem:[#allocation1 + $0x128] sm:$0x3] %v2076_v41 }
  0x4e   :  { %v1148_v6 = vld [vmem:[#allocation1 + $0xd0] sm:$0x2]   ;;  %v1133_v29 = vsel %vm663_vm5, %v1131_v2, %v1129_v23  ;;  %v1258_v47 = vld [vmem:[#allocation1 + $0x28f] sm:$0x2]   ;;  %v2080_v45 = vld [vmem:[%s2844_s0 + $0x42] sm:$0x3] }
  0x4f   :  { %v1152_v7 = vld [vmem:[#allocation1 + $0x14f] sm:$0x4]   ;;  %v1137_v34 = vsel %vm667_vm6, %v1135_v5, %v1133_v29  ;;  %v1246_v50 = vld [vmem:[#allocation1 + $0x1a9] sm:$0x80]   ;;  %v1260_v51 = vsel %vm643_vm0, %v1258_v47, %v1256_v46  ;;  %v2092_v46 = vld [vmem:[%s2844_s0 + $0x2a] sm:$0x3] }
  0x50   :  { %v1156_v8 = vld [vmem:[#allocation1 + $0x1ce] sm:$0x8]   ;;  %1138 = vrot.lane.b32.xlu1 %v1137_v34, %s2129_s19  ;;  %v1262_v52 = vld [vmem:[#allocation1 + $0x30e] sm:$0x4]   ;;  %v1248_v63 = vsel %vm667_vm6, %v1246_v50, %v1244_v57  ;;  %v2096_v47 = vld [vmem:[%s2844_s0 + $0x22] sm:$0x3] }
  0x51   :  { %v1146_v11 = vld [vmem:[#allocation1 + $0x51] sm:$0x1]   ;;  %v1266_v53 = vld [vmem:[#allocation1 + $0x38d] sm:$0x8]   ;;  %v1264_v55 = vsel %vm647_vm1, %v1262_v52, %v1260_v51  ;;  %478 = vst [vmem:[#allocation1 + $0x108] sm:$0x3] %v2080_v45 }
  0x52   :  { %v1160_v12 = vld [vmem:[#allocation1 + $0x6d] sm:$0x10]   ;;  %v1150_v17 = vsel %vm643_vm0, %v1148_v6, %v1146_v11  ;;  %v1270_v56 = vld [vmem:[#allocation1 + $0x22c] sm:$0x10]   ;;  %v1268_v58 = vsel %vm651_vm2, %v1266_v53, %v1264_v55  ;;  %538 = vst [vmem:[#allocation1 + $0xa8] sm:$0x3] %v2092_v46 }
  0x53   :  { %v1164_v13 = vld [vmem:[#allocation1 + $0xec] sm:$0x20]   ;;  %v1154_v24 = vsel %vm647_vm1, %v1152_v7, %v1150_v17  ;;  %v1274_v59 = vld [vmem:[#allocation1 + $0x2ab] sm:$0x20]   ;;  %v1272_v2 = vsel %vm655_vm3, %v1270_v56, %v1268_v58  ;;  %558 = vst [vmem:[#allocation1 + $0x88] sm:$0x3] %v2096_v47 }
  0x54   :  { %v1168_v18 = vld [vmem:[#allocation1 + $0x16b] sm:$0x40]   ;;  %v1158_v30 = vsel %vm651_vm2, %v1156_v8, %v1154_v24  ;;  %v1293_v3 = vld [vmem:[#allocation1 + $0x50] sm:$0x1]   ;;  %v1276_v17 = vsel %vm659_vm4, %v1274_v59, %v1272_v2  ;;  %v2108_v51 = vld [vmem:[%s2844_s0 + $0xa] sm:$0x3] }
  0x55   :  { %v1172_v25 = vld [vmem:[#allocation1 + $0x1ea] sm:$0x80]   ;;  %v1162_v35 = vsel %vm655_vm3, %v1160_v12, %v1158_v30  ;;  %v1278_v6 = vld [vmem:[#allocation1 + $0x32a] sm:$0x40]   ;;  %v2112_v52 = vld [vmem:[%s2844_s0 + $0x2] sm:$0x3] }
  0x56   :  { %v1166_v40 = vsel %vm659_vm4, %v1164_v13, %v1162_v35  ;;  %v1185_v60 = vld [vmem:[#allocation1 + $0x2d0] sm:$0x2]   ;;  %v1295_v7 = vld [vmem:[#allocation1 + $0xcf] sm:$0x2]   ;;  %v1280_v36 = vsel %vm663_vm5, %v1278_v6, %v1276_v17  ;;  %v1996_v53 = vld [vmem:[%s2844_s0 + $0xea] sm:$0x3] }
  0x57   :  { %v1170_v43 = vsel %vm663_vm5, %v1168_v18, %v1166_v40  ;;  %v1189_v61 = vld [vmem:[#allocation1 + $0x34f] sm:$0x4]   ;;  %v1299_v8 = vld [vmem:[#allocation1 + $0x14e] sm:$0x4]   ;;  %v1297_v13 = vsel %vm643_vm0, %v1295_v7, %v1293_v3  ;;  %v2064_v40 = vld [vmem:[%s2844_s0 + $0x62] sm:$0x3] }
  0x58   :  { %v1174_v48 = vsel %vm667_vm6, %v1172_v25, %v1170_v43  ;;  %v1193_v62 = vld [vmem:[#allocation1 + $0x3ce] sm:$0x8]   ;;  %v1303_v9 = vld [vmem:[#allocation1 + $0x1cd] sm:$0x8]   ;;  %v1301_v18 = vsel %vm647_vm1, %v1299_v8, %v1297_v13  ;;  %398 = vst [vmem:[#allocation1 + $0x188] sm:$0x3] %v2064_v40 }
  0x59   :  { %1175 = vrot.lane.b32.xlu0 %v1174_v48, %s2129_s19  ;;  %v1183_v0 = vld [vmem:[#allocation1 + $0x251] sm:$0x1]   ;;  %v1307_v14 = vld [vmem:[#allocation1 + $0x6c] sm:$0x10]   ;;  %v1305_v24 = vsel %vm651_vm2, %v1303_v9, %v1301_v18  ;;  %618 = vst [vmem:[#allocation1 + $0x28] sm:$0x3] %v2108_v51 }
  0x5a   :  { %v1197_v1 = vld [vmem:[#allocation1 + $0x26d] sm:$0x10]   ;;  %v1187_v4 = vsel %vm643_vm0, %v1185_v60, %v1183_v0  ;;  %v1311_v15 = vld [vmem:[#allocation1 + $0xeb] sm:$0x20]   ;;  %v1309_v30 = vsel %vm655_vm3, %v1307_v14, %v1305_v24  ;;  %637 = vst [vmem:[#allocation1 + $0x8] sm:$0x3] %v2112_v52 }
  0x5b   :  { %v1205_v5 = vld [vmem:[#allocation1 + $0x36b] sm:$0x40]   ;;  %v1191_v10 = vsel %vm647_vm1, %v1189_v61, %v1187_v4  ;;  %v1315_v19 = vld [vmem:[#allocation1 + $0x16a] sm:$0x40]   ;;  %v1313_v37 = vsel %vm659_vm4, %v1311_v15, %v1309_v30  ;;  %58 = vst [vmem:[#allocation1 + $0x3a8] sm:$0x3] %v1996_v53 }
  0x5c   :  { %v1201_v11 = vld [vmem:[#allocation1 + $0x2ec] sm:$0x20]   ;;  %v1195_v16 = vsel %vm651_vm2, %v1193_v62, %v1191_v10  ;;  %v1330_v20 = vld [vmem:[#allocation1 + $0x250] sm:$0x1]   ;;  %v1317_v43 = vsel %vm663_vm5, %v1315_v19, %v1313_v37  ;;  %v2000_v55 = vld [vmem:[%s2844_s0 + $0xe2] sm:$0x3] }
  0x5d   :  { %1249 = vrot.lane.b32.xlu0 %v1248_v63, %s2130_s22  ;;  %v1209_v12 = vld [vmem:[#allocation1 + $0x3ea] sm:$0x80]   ;;  %v1332_v21 = vld [vmem:[#allocation1 + $0x2cf] sm:$0x2]   ;;  %v1199_v22 = vsel %vm655_vm3, %v1197_v1, %v1195_v16  ;;  %v2012_v56 = vld [vmem:[%s2844_s0 + $0xca] sm:$0x3] }
  0x5e   :  { %v1282_v23 = vld [vmem:[#allocation1 + $0x3a9] sm:$0x80]   ;;  %v1334_v25 = vsel %vm643_vm0, %v1332_v21, %v1330_v20  ;;  %v1203_v29 = vsel %vm659_vm4, %v1201_v11, %v1199_v22  ;;  %v2016_v57 = vld [vmem:[%s2844_s0 + $0xc2] sm:$0x3]  ;;  %78 = vst [vmem:[#allocation1 + $0x388] sm:$0x3] %v2000_v55 }
  0x5f   :  { %v1336_v26 = vld [vmem:[#allocation1 + $0x34e] sm:$0x4]   ;;  %v1207_v35 = vsel %vm663_vm5, %v1205_v5, %v1203_v29  ;;  %v1284_v54 = vsel %vm667_vm6, %v1282_v23, %v1280_v36  ;;  %138 = vst [vmem:[#allocation1 + $0x328] sm:$0x3] %v2012_v56  ;;  %158 = vst [vmem:[#allocation1 + $0x308] sm:$0x3] %v2016_v57 }
  0x60   :  { %v1340_v27 = vld [vmem:[#allocation1 + $0x3cd] sm:$0x8]   ;;  %v1338_v32 = vsel %vm647_vm1, %v1336_v26, %v1334_v25  ;;  %v1211_v42 = vsel %vm667_vm6, %v1209_v12, %v1207_v35  ;;  %v2028_v59 = vld [vmem:[%s2844_s0 + $0xaa] sm:$0x3]  ;;  %v2032_v60 = vld [vmem:[%s2844_s0 + $0xa2] sm:$0x3] }
  0x61   :  { %v1344_v28 = vld [vmem:[#allocation1 + $0x26c] sm:$0x10]   ;;  %v1342_v38 = vsel %vm651_vm2, %v1340_v27, %v1338_v32  ;;  %1212 = vrot.lane.b32.xlu1 %v1211_v42, %s2129_s19  ;;  %v2044_v61 = vld [vmem:[%s2844_s0 + $0x8a] sm:$0x3]  ;;  %218 = vst [vmem:[#allocation1 + $0x2a8] sm:$0x3] %v2028_v59 }
  0x62   :  { %v1319_v31 = vld [vmem:[#allocation1 + $0x1e9] sm:$0x80]   ;;  %v1346_v44 = vsel %vm655_vm3, %v1344_v28, %v1342_v38  ;;  %238 = vst [vmem:[#allocation1 + $0x288] sm:$0x3] %v2032_v60  ;;  %298 = vst [vmem:[#allocation1 + $0x228] sm:$0x3] %v2044_v61 }
  0x63   :  { %v1348_v33 = vld [vmem:[#allocation1 + $0x2eb] sm:$0x20]   ;;  %v1321_v48 = vsel %vm667_vm6, %v1319_v31, %v1317_v43  ;;  %v2048_v62 = vld [vmem:[%s2844_s0 + $0x82] sm:$0x3]  ;;  %v2052_v63 = vld [vmem:[%s2844_s0 + $0x7a] sm:$0x3] }
  0x64   :  { %v1352_v34 = vld [vmem:[#allocation1 + $0x36a] sm:$0x40]   ;;  %v1350_v49 = vsel %vm659_vm4, %v1348_v33, %v1346_v44  ;;  %1322 = vrot.lane.b32.xlu0 %v1321_v48, %s2130_s22  ;;  %v2056_v0 = vld [vmem:[%s2844_s0 + $0x72] sm:$0x3]  ;;  %318 = vst [vmem:[#allocation1 + $0x208] sm:$0x3] %v2048_v62 }
  0x65   :  { %v1356_v50 = vld [vmem:[#allocation1 + $0x3e9] sm:$0x80]   ;;  %v1354_v58 = vsel %vm663_vm5, %v1352_v34, %v1350_v49  ;;  %1285 = vrot.lane.b32.xlu1 %v1284_v54, %s2130_s22  ;;  %338 = vst [vmem:[#allocation1 + $0x1e8] sm:$0x3] %v2052_v63  ;;  %358 = vst [vmem:[#allocation1 + $0x1c8] sm:$0x3] %v2056_v0 }
  0x66   :  { %v2068_v1 = vld [vmem:[%s2844_s0 + $0x5a] sm:$0x3]  ;;  %v2072_v2 = vld [vmem:[%s2844_s0 + $0x52] sm:$0x3]  ;;  %v1358_v4 = vsel %vm667_vm6, %v1356_v50, %v1354_v58  ;;  %v1369_v8 = vld [vmem:[#allocation1 + $0x88] sm:$0x2]  }
  0x67   :  { %v2084_v3 = vld [vmem:[%s2844_s0 + $0x3a] sm:$0x3]  ;;  %418 = vst [vmem:[#allocation1 + $0x168] sm:$0x3] %v2068_v1  ;;  %438 = vst [vmem:[#allocation1 + $0x148] sm:$0x3] %v2072_v2 }
  0x68   :  { %498 = vst [vmem:[#allocation1 + $0xe8] sm:$0x3] %v2084_v3  ;;  %v2088_v5 = vld [vmem:[%s2844_s0 + $0x32] sm:$0x3]  ;;  %v2100_v6 = vld [vmem:[%s2844_s0 + $0x1a] sm:$0x3] }
  0x69   :  { %v2104_v7 = vld [vmem:[%s2844_s0 + $0x12] sm:$0x3]  ;;  %518 = vst [vmem:[#allocation1 + $0xc8] sm:$0x3] %v2088_v5  ;;  %578 = vst [vmem:[#allocation1 + $0x68] sm:$0x3] %v2100_v6  ;;  %1359 = vrot.lane.b32.xlu1 %v1358_v4, %s2130_s22 }
  0x6a   :  { %598 = vst [vmem:[#allocation1 + $0x48] sm:$0x3] %v2104_v7  ;;  %v1373_v9 = vld [vmem:[#allocation1 + $0x107] sm:$0x4]   ;;  %v1988_v41 = vld [vmem:[%s2844_s0 + $0xfa] sm:$0x3] }
  0x6b   :  { %v1367_v10 = vld [vmem:[#allocation1 + $0x9] sm:$0x1]   ;;  %v1992_v42 = vld [vmem:[%s2844_s0 + $0xf2] sm:$0x3]  ;;  %v2004_v43 = vld [vmem:[%s2844_s0 + $0xda] sm:$0x3] }
  0x6c   :  { %v1377_v11 = vld [vmem:[#allocation1 + $0x186] sm:$0x8]   ;;  %v1371_v12 = vsel %vm643_vm0, %v1369_v8, %v1367_v10  ;;  %18 = vst [vmem:[#allocation1 + $0x3e8] sm:$0x3] %v1988_v41  ;;  %38 = vst [vmem:[#allocation1 + $0x3c8] sm:$0x3] %v1992_v42 }
  0x6d   :  { %v1381_v13 = vld [vmem:[#allocation1 + $0x25] sm:$0x10]   ;;  %v1375_v15 = vsel %vm647_vm1, %v1373_v9, %v1371_v12  ;;  %98 = vst [vmem:[#allocation1 + $0x368] sm:$0x3] %v2004_v43  ;;  %v2008_v48 = vld [vmem:[%s2844_s0 + $0xd2] sm:$0x3] }
  0x6e   :  { %v1389_v14 = vld [vmem:[#allocation1 + $0x123] sm:$0x40]   ;;  %v1379_v20 = vsel %vm651_vm2, %v1377_v11, %v1375_v15  ;;  %v2020_v49 = vld [vmem:[%s2844_s0 + $0xba] sm:$0x3]  ;;  %v2024_v50 = vld [vmem:[%s2844_s0 + $0xb2] sm:$0x3] }
  0x6f   :  { %v1385_v16 = vld [vmem:[#allocation1 + $0xa4] sm:$0x20]   ;;  %v1383_v24 = vsel %vm655_vm3, %v1381_v13, %v1379_v20  ;;  %118 = vst [vmem:[#allocation1 + $0x348] sm:$0x3] %v2008_v48  ;;  %178 = vst [vmem:[#allocation1 + $0x2e8] sm:$0x3] %v2020_v49 }
  0x70   :  { %v1393_v17 = vld [vmem:[#allocation1 + $0x1a2] sm:$0x80]   ;;  %v1387_v30 = vsel %vm659_vm4, %v1385_v16, %v1383_v24  ;;  %198 = vst [vmem:[#allocation1 + $0x2c8] sm:$0x3] %v2024_v50  ;;  %v2036_v53 = vld [vmem:[%s2844_s0 + $0x9a] sm:$0x3] }
  0x71   :  { %v1405_v18 = vld [vmem:[#allocation1 + $0x288] sm:$0x2]   ;;  %v1391_v37 = vsel %vm663_vm5, %v1389_v14, %v1387_v30  ;;  %v2040_v54 = vld [vmem:[%s2844_s0 + $0x92] sm:$0x3]  ;;  %v1514_v55 = vld [vmem:[#allocation1 + $0x8] sm:$0x1]  }
  0x72   :  { %v1409_v19 = vld [vmem:[#allocation1 + $0x307] sm:$0x4]   ;;  %v1395_v44 = vsel %vm667_vm6, %v1393_v17, %v1391_v37  ;;  %258 = vst [vmem:[#allocation1 + $0x268] sm:$0x3] %v2036_v53  ;;  %278 = vst [vmem:[#allocation1 + $0x248] sm:$0x3] %v2040_v54 }
  0x73   :  { %v1403_v21 = vld [vmem:[#allocation1 + $0x209] sm:$0x1]   ;;  %1396 = vrot.lane.b32.xlu0 %v1395_v44, %s2131_s26  ;;  %v1516_v58 = vld [vmem:[#allocation1 + $0x87] sm:$0x2]  }
  0x74   :  { %v1413_v22 = vld [vmem:[#allocation1 + $0x386] sm:$0x8]   ;;  %v1407_v25 = vsel %vm643_vm0, %v1405_v18, %v1403_v21  ;;  %v1520_v59 = vld [vmem:[#allocation1 + $0x106] sm:$0x4]   ;;  %v1518_v63 = vsel %vm643_vm0, %v1516_v58, %v1514_v55 }
  0x75   :  { %v1417_v23 = vld [vmem:[#allocation1 + $0x225] sm:$0x10]   ;;  %v1411_v31 = vsel %vm647_vm1, %v1409_v19, %v1407_v25  ;;  %v1524_v60 = vld [vmem:[#allocation1 + $0x185] sm:$0x8]   ;;  %v1522_v2 = vsel %vm647_vm1, %v1520_v59, %v1518_v63 }
  0x76   :  { %v1421_v26 = vld [vmem:[#allocation1 + $0x2a4] sm:$0x20]   ;;  %v1415_v38 = vsel %vm651_vm2, %v1413_v22, %v1411_v31  ;;  %v1528_v0 = vld [vmem:[#allocation1 + $0x24] sm:$0x10]   ;;  %v1526_v7 = vsel %vm651_vm2, %v1524_v60, %v1522_v2 }
  0x77   :  { %v1425_v27 = vld [vmem:[#allocation1 + $0x323] sm:$0x40]   ;;  %v1419_v45 = vsel %vm655_vm3, %v1417_v23, %v1415_v38  ;;  %v1532_v3 = vld [vmem:[#allocation1 + $0xa3] sm:$0x20]   ;;  %v1530_v11 = vsel %vm655_vm3, %v1528_v0, %v1526_v7 }
  0x78   :  { %v1446_v28 = vld [vmem:[#allocation1 + $0x147] sm:$0x4]   ;;  %v1423_v51 = vsel %vm659_vm4, %v1421_v26, %v1419_v45  ;;  %v1536_v4 = vld [vmem:[#allocation1 + $0x122] sm:$0x40]   ;;  %v1534_v15 = vsel %vm659_vm4, %v1532_v3, %v1530_v11  ;;  %v2065_v3 = vld [vmem:[%s2844_s0 + $0x60] sm:$0x3] }
  0x79   :  { %v1450_v29 = vld [vmem:[#allocation1 + $0x1c6] sm:$0x8]   ;;  %v1427_v56 = vsel %vm663_vm5, %v1425_v27, %v1423_v51  ;;  %v1550_v5 = vld [vmem:[#allocation1 + $0x208] sm:$0x1]   ;;  %v1538_v19 = vsel %vm663_vm5, %v1536_v4, %v1534_v15  ;;  %v2069_v4 = vld [vmem:[%s2844_s0 + $0x58] sm:$0x3] }
  0x7a   :  { %v1429_v32 = vld [vmem:[#allocation1 + $0x3a2] sm:$0x80]   ;;  %v1552_v8 = vld [vmem:[#allocation1 + $0x287] sm:$0x2]   ;;  %403 = vst [vmem:[#allocation1 + $0x180] sm:$0x3] %v2065_v3 }
  0x7b   :  { %v1440_v33 = vld [vmem:[#allocation1 + $0x49] sm:$0x1]   ;;  %v1431_v61 = vsel %vm667_vm6, %v1429_v32, %v1427_v56  ;;  %v1556_v9 = vld [vmem:[#allocation1 + $0x306] sm:$0x4]   ;;  %v1554_v13 = vsel %vm643_vm0, %v1552_v8, %v1550_v5  ;;  %v2073_v5 = vld [vmem:[%s2844_s0 + $0x50] sm:$0x3] }
  0x7c   :  { %v1442_v34 = vld [vmem:[#allocation1 + $0xc8] sm:$0x2]   ;;  %1432 = vrot.lane.b32.xlu1 %v1431_v61, %s2131_s26  ;;  %v1560_v10 = vld [vmem:[#allocation1 + $0x385] sm:$0x8]   ;;  %v1558_v16 = vsel %vm647_vm1, %v1556_v9, %v1554_v13  ;;  %423 = vst [vmem:[#allocation1 + $0x160] sm:$0x3] %v2069_v4 }
  0x7d   :  { %v1454_v35 = vld [vmem:[#allocation1 + $0x65] sm:$0x10]   ;;  %v1444_v39 = vsel %vm643_vm0, %v1442_v34, %v1440_v33  ;;  %v1540_v12 = vld [vmem:[#allocation1 + $0x1a1] sm:$0x80]   ;;  %v1562_v20 = vsel %vm651_vm2, %v1560_v10, %v1558_v16  ;;  %443 = vst [vmem:[#allocation1 + $0x140] sm:$0x3] %v2073_v5 }
  0x7e   :  { %v1458_v36 = vld [vmem:[#allocation1 + $0xe4] sm:$0x20]   ;;  %v1448_v46 = vsel %vm647_vm1, %v1446_v28, %v1444_v39  ;;  %v1564_v14 = vld [vmem:[#allocation1 + $0x224] sm:$0x10]   ;;  %v1542_v25 = vsel %vm667_vm6, %v1540_v12, %v1538_v19  ;;  %v2081_v10 = vld [vmem:[%s2844_s0 + $0x40] sm:$0x3] }
  0x7f   :  { %v1462_v40 = vld [vmem:[#allocation1 + $0x163] sm:$0x40]   ;;  %v1452_v52 = vsel %vm651_vm2, %v1450_v29, %v1448_v46  ;;  %v1568_v21 = vld [vmem:[#allocation1 + $0x2a3] sm:$0x20]   ;;  %v1566_v26 = vsel %vm655_vm3, %v1564_v14, %v1562_v20  ;;  %483 = vst [vmem:[#allocation1 + $0x100] sm:$0x3] %v2081_v10 }
  0x80   :  { %v1466_v47 = vld [vmem:[#allocation1 + $0x1e2] sm:$0x80]   ;;  %v1456_v57 = vsel %vm655_vm3, %v1454_v35, %v1452_v52  ;;  %v1572_v29 = vld [vmem:[#allocation1 + $0x322] sm:$0x40]   ;;  %v2097_v14 = vld [vmem:[%s2844_s0 + $0x20] sm:$0x3] }
  0x81   :  { %v1460_v62 = vsel %vm659_vm4, %v1458_v36, %v1456_v57  ;;  %v1479_v17 = vld [vmem:[#allocation1 + $0x2c8] sm:$0x2]   ;;  %v1587_v30 = vld [vmem:[#allocation1 + $0x48] sm:$0x1]   ;;  %v2101_v15 = vld [vmem:[%s2844_s0 + $0x18] sm:$0x3] }
  0x82   :  { %v1464_v1 = vsel %vm663_vm5, %v1462_v40, %v1460_v62  ;;  %v1483_v18 = vld [vmem:[#allocation1 + $0x347] sm:$0x4]   ;;  %v1589_v31 = vld [vmem:[#allocation1 + $0xc7] sm:$0x2]   ;;  %v1570_v40 = vsel %vm659_vm4, %v1568_v21, %v1566_v26  ;;  %v2057_v62 = vld [vmem:[%s2844_s0 + $0x70] sm:$0x3] }
  0x83   :  { %v1468_v6 = vsel %vm667_vm6, %v1466_v47, %v1464_v1  ;;  %v1477_v22 = vld [vmem:[#allocation1 + $0x249] sm:$0x1]   ;;  %v1593_v32 = vld [vmem:[#allocation1 + $0x146] sm:$0x4]   ;;  %v1591_v36 = vsel %vm643_vm0, %v1589_v31, %v1587_v30  ;;  %v1574_v58 = vsel %vm663_vm5, %v1572_v29, %v1570_v40  ;;  %363 = vst [vmem:[#allocation1 + $0x1c0] sm:$0x3] %v2057_v62 }
  0x84   :  { %1469 = vrot.lane.b32.xlu0 %v1468_v6, %s2131_s26  ;;  %v1487_v23 = vld [vmem:[#allocation1 + $0x3c6] sm:$0x8]   ;;  %v1481_v27 = vsel %vm643_vm0, %v1479_v17, %v1477_v22  ;;  %v1597_v37 = vld [vmem:[#allocation1 + $0x1c5] sm:$0x8]   ;;  %v1595_v41 = vsel %vm647_vm1, %v1593_v32, %v1591_v36  ;;  %v2105_v16 = vld [vmem:[%s2844_s0 + $0x10] sm:$0x3] }
  0x85   :  { %v1491_v24 = vld [vmem:[#allocation1 + $0x265] sm:$0x10]   ;;  %v1485_v33 = vsel %vm647_vm1, %v1483_v18, %v1481_v27  ;;  %v1601_v38 = vld [vmem:[#allocation1 + $0x64] sm:$0x10]   ;;  %v1599_v47 = vsel %vm651_vm2, %v1597_v37, %v1595_v41  ;;  %563 = vst [vmem:[#allocation1 + $0x80] sm:$0x3] %v2097_v14 }
  0x86   :  { %v1499_v28 = vld [vmem:[#allocation1 + $0x363] sm:$0x40]   ;;  %v1489_v39 = vsel %vm651_vm2, %v1487_v23, %v1485_v33  ;;  %v1605_v42 = vld [vmem:[#allocation1 + $0xe3] sm:$0x20]   ;;  %v1603_v52 = vsel %vm655_vm3, %v1601_v38, %v1599_v47  ;;  %583 = vst [vmem:[#allocation1 + $0x60] sm:$0x3] %v2101_v15 }
  0x87   :  { %v1495_v34 = vld [vmem:[#allocation1 + $0x2e4] sm:$0x20]   ;;  %v1609_v43 = vld [vmem:[#allocation1 + $0x162] sm:$0x40]   ;;  %v1493_v45 = vsel %vm655_vm3, %v1491_v24, %v1489_v39  ;;  %v1607_v59 = vsel %vm659_vm4, %v1605_v42, %v1603_v52  ;;  %603 = vst [vmem:[#allocation1 + $0x40] sm:$0x3] %v2105_v16 }
  0x88   :  { %1543 = vrot.lane.b32.xlu0 %v1542_v25, %s2132_s2  ;;  %v1503_v35 = vld [vmem:[#allocation1 + $0x3e2] sm:$0x80]   ;;  %v1624_v44 = vld [vmem:[#allocation1 + $0x248] sm:$0x1]   ;;  %v1497_v51 = vsel %vm659_vm4, %v1495_v34, %v1493_v45  ;;  %v1611_v1 = vsel %vm663_vm5, %v1609_v43, %v1607_v59  ;;  %v638_v19 = vld [vmem:[%s2844_s0] sm:$0x3] }
  0x89   :  { %v1576_v46 = vld [vmem:[#allocation1 + $0x3a1] sm:$0x80]   ;;  %v1501_v57 = vsel %vm663_vm5, %v1499_v28, %v1497_v51  ;;  %639 = vst [vmem:[#allocation1] sm:$0x3] %v638_v19  ;;  %v2001_v21 = vld [vmem:[%s2844_s0 + $0xe0] sm:$0x3] }
  0x8a   :  { %v1626_v48 = vld [vmem:[#allocation1 + $0x2c7] sm:$0x2]   ;;  %v1505_v0 = vsel %vm667_vm6, %v1503_v35, %v1501_v57  ;;  %v1578_v12 = vsel %vm667_vm6, %v1576_v46, %v1574_v58  ;;  %v2005_v22 = vld [vmem:[%s2844_s0 + $0xd8] sm:$0x3]  ;;  %v2009_v23 = vld [vmem:[%s2844_s0 + $0xd0] sm:$0x3] }
  0x8b   :  { %v1630_v49 = vld [vmem:[#allocation1 + $0x346] sm:$0x4]   ;;  %v1628_v54 = vsel %vm643_vm0, %v1626_v48, %v1624_v44  ;;  %1506 = vrot.lane.b32.xlu1 %v1505_v0, %s2131_s26  ;;  %83 = vst [vmem:[#allocation1 + $0x380] sm:$0x3] %v2001_v21  ;;  %103 = vst [vmem:[#allocation1 + $0x360] sm:$0x3] %v2005_v22 }
  0x8c   :  { %v1634_v50 = vld [vmem:[#allocation1 + $0x3c5] sm:$0x8]   ;;  %v1632_v60 = vsel %vm647_vm1, %v1630_v49, %v1628_v54  ;;  %123 = vst [vmem:[#allocation1 + $0x340] sm:$0x3] %v2009_v23  ;;  %v2017_v25 = vld [vmem:[%s2844_s0 + $0xc0] sm:$0x3] }
  0x8d   :  { %v1613_v53 = vld [vmem:[#allocation1 + $0x1e1] sm:$0x80]   ;;  %v1636_v2 = vsel %vm651_vm2, %v1634_v50, %v1632_v60  ;;  %163 = vst [vmem:[#allocation1 + $0x300] sm:$0x3] %v2017_v25  ;;  %v2033_v28 = vld [vmem:[%s2844_s0 + $0xa0] sm:$0x3] }
  0x8e   :  { %v1638_v55 = vld [vmem:[#allocation1 + $0x264] sm:$0x10]   ;;  %v1615_v6 = vsel %vm667_vm6, %v1613_v53, %v1611_v1  ;;  %v2037_v29 = vld [vmem:[%s2844_s0 + $0x98] sm:$0x3]  ;;  %v2041_v30 = vld [vmem:[%s2844_s0 + $0x90] sm:$0x3] }
  0x8f   :  { %v1642_v56 = vld [vmem:[#allocation1 + $0x2e3] sm:$0x20]   ;;  %v1640_v7 = vsel %vm655_vm3, %v1638_v55, %v1636_v2  ;;  %1616 = vrot.lane.b32.xlu0 %v1615_v6, %s2132_s2  ;;  %1579 = vrot.lane.b32.xlu1 %v1578_v12, %s2132_s2  ;;  %243 = vst [vmem:[#allocation1 + $0x280] sm:$0x3] %v2033_v28  ;;  %263 = vst [vmem:[#allocation1 + $0x260] sm:$0x3] %v2037_v29 }
  0x90   :  { %v1646_v61 = vld [vmem:[#allocation1 + $0x362] sm:$0x40]   ;;  %v1644_v13 = vsel %vm659_vm4, %v1642_v56, %v1640_v7  ;;  %283 = vst [vmem:[#allocation1 + $0x240] sm:$0x3] %v2041_v30  ;;  %v674_v31 = vld [vmem:[#allocation1 + $0x100] sm:$0x1]  }
  0x91   :  { %v2061_v63 = vld [vmem:[%s2844_s0 + $0x68] sm:$0x3]  ;;  %v1648_v17 = vsel %vm663_vm5, %v1646_v61, %v1644_v13  ;;  %v680_v33 = vld [vmem:[#allocation1 + $0x13e] sm:$0x4]   ;;  %v1661_v37 = vld [vmem:[#allocation1 + $0x1] sm:$0x1]  }
  0x92   :  { %383 = vst [vmem:[#allocation1 + $0x1a0] sm:$0x3] %v2061_v63  ;;  %v1650_v8 = vld [vmem:[#allocation1 + $0x3e1] sm:$0x80]   ;;  %v640_v34 = vld [vmem:[#allocation1] sm:$0x1]  }
  0x93   :  { %v2077_v9 = vld [vmem:[%s2844_s0 + $0x48] sm:$0x3]  ;;  %v1652_v27 = vsel %vm667_vm6, %v1650_v8, %v1648_v17  ;;  %v1663_v38 = vld [vmem:[#allocation1 + $0x80] sm:$0x2]   ;;  %v684_v41 = vld [vmem:[#allocation1 + $0x15d] sm:$0x8]  }
  0x94   :  { %v2093_v11 = vld [vmem:[%s2844_s0 + $0x28] sm:$0x3]  ;;  %463 = vst [vmem:[#allocation1 + $0x120] sm:$0x3] %v2077_v9  ;;  %1653 = vrot.lane.b32.xlu1 %v1652_v27, %s2132_s2  ;;  %v1667_v39 = vld [vmem:[#allocation1 + $0xff] sm:$0x4]   ;;  %v1665_v42 = vsel %vm643_vm0, %v1663_v38, %v1661_v37 }
  0x95   :  { %543 = vst [vmem:[#allocation1 + $0xa0] sm:$0x3] %v2093_v11  ;;  %v2109_v18 = vld [vmem:[%s2844_s0 + $0x8] sm:$0x3]  ;;  %v1671_v40 = vld [vmem:[#allocation1 + $0x17e] sm:$0x8]   ;;  %v1669_v45 = vsel %vm647_vm1, %v1667_v39, %v1665_v42 }
  0x96   :  { %v1997_v20 = vld [vmem:[%s2844_s0 + $0xe8] sm:$0x3]  ;;  %623 = vst [vmem:[#allocation1 + $0x20] sm:$0x3] %v2109_v18  ;;  %v2049_v48 = vld [vmem:[%s2844_s0 + $0x80] sm:$0x3]  ;;  %v1673_v51 = vsel %vm651_vm2, %v1671_v40, %v1669_v45 }
  0x97   :  { %63 = vst [vmem:[#allocation1 + $0x3a0] sm:$0x3] %v1997_v20  ;;  %v2013_v24 = vld [vmem:[%s2844_s0 + $0xc8] sm:$0x3]  ;;  %v646_v50 = vld [vmem:[#allocation1 + $0x3e] sm:$0x4]  }
  0x98   :  { %v2029_v26 = vld [vmem:[%s2844_s0 + $0xa8] sm:$0x3]  ;;  %143 = vst [vmem:[#allocation1 + $0x320] sm:$0x3] %v2013_v24  ;;  %323 = vst [vmem:[#allocation1 + $0x200] sm:$0x3] %v2049_v48 }
  0x99   :  { %223 = vst [vmem:[#allocation1 + $0x2a0] sm:$0x3] %v2029_v26  ;;  %v2045_v47 = vld [vmem:[%s2844_s0 + $0x88] sm:$0x3]  ;;  %v1687_v54 = vld [vmem:[#allocation1 + $0x19a] sm:$0x80]  }
  0x9a   :  { %303 = vst [vmem:[#allocation1 + $0x220] sm:$0x3] %v2045_v47  ;;  %v744_v55 = vld [vmem:[#allocation1 + $0x300] sm:$0x1]   ;;  %v1699_v5 = vld [vmem:[#allocation1 + $0x280] sm:$0x2]  }
  0x9b   :  { %v676_v32 = vld [vmem:[#allocation1 + $0x11f] sm:$0x2]   ;;  %v1683_v52 = vld [vmem:[#allocation1 + $0x11b] sm:$0x40]   ;;  %v2053_v7 = vld [vmem:[%s2844_s0 + $0x78] sm:$0x3] }
  0x9c   :  { %v678_v36 = vsel %vm643_vm0, %v676_v32, %v674_v31  ;;  %v1679_v46 = vld [vmem:[#allocation1 + $0x9c] sm:$0x20]   ;;  %v688_v58 = vld [vmem:[#allocation1 + $0x17c] sm:$0x10]   ;;  %v2085_v8 = vld [vmem:[%s2844_s0 + $0x38] sm:$0x3] }
  0x9d   :  { %v642_v35 = vld [vmem:[#allocation1 + $0x1f] sm:$0x2]   ;;  %v1675_v43 = vld [vmem:[#allocation1 + $0x1d] sm:$0x10]   ;;  %v682_v44 = vsel %vm647_vm1, %v680_v33, %v678_v36  ;;  %v2089_v9 = vld [vmem:[%s2844_s0 + $0x30] sm:$0x3] }
  0x9e   :  { %v644_v49 = vsel %vm643_vm0, %v642_v35, %v640_v34  ;;  %v1677_v53 = vsel %vm655_vm3, %v1675_v43, %v1673_v51  ;;  %v686_v57 = vsel %vm651_vm2, %v684_v41, %v682_v44  ;;  %v650_v61 = vld [vmem:[#allocation1 + $0x5d] sm:$0x8]   ;;  %v1703_v15 = vld [vmem:[#allocation1 + $0x2ff] sm:$0x4]   ;;  %343 = vst [vmem:[#allocation1 + $0x1e0] sm:$0x3] %v2053_v7 }
  0x9f   :  { %v746_v56 = vld [vmem:[#allocation1 + $0x31f] sm:$0x2]   ;;  %v1681_v59 = vsel %vm659_vm4, %v1679_v46, %v1677_v53  ;;  %v648_v60 = vsel %vm647_vm1, %v646_v50, %v644_v49  ;;  %v690_v6 = vsel %vm655_vm3, %v688_v58, %v686_v57  ;;  %v1707_v16 = vld [vmem:[#allocation1 + $0x37e] sm:$0x8]   ;;  %503 = vst [vmem:[#allocation1 + $0xe0] sm:$0x3] %v2085_v8 }
  0xa0   :  { %v692_v62 = vld [vmem:[#allocation1 + $0x19b] sm:$0x20]   ;;  %v1685_v63 = vsel %vm663_vm5, %v1683_v52, %v1681_v59  ;;  %v748_v0 = vsel %vm643_vm0, %v746_v56, %v744_v55  ;;  %v652_v10 = vsel %vm651_vm2, %v650_v61, %v648_v60  ;;  %523 = vst [vmem:[#allocation1 + $0xc0] sm:$0x3] %v2089_v9  ;;  %v1697_v20 = vld [vmem:[#allocation1 + $0x201] sm:$0x1]  }
  0xa1   :  { %v750_v1 = vld [vmem:[#allocation1 + $0x33e] sm:$0x4]   ;;  %v1689_v3 = vsel %vm667_vm6, %v1687_v54, %v1685_v63  ;;  %v694_v21 = vsel %vm659_vm4, %v692_v62, %v690_v6  ;;  %v1701_v24 = vsel %vm643_vm0, %v1699_v5, %v1697_v20  ;;  %v1711_v25 = vld [vmem:[#allocation1 + $0x21d] sm:$0x10]   ;;  %v1989_v31 = vld [vmem:[%s2844_s0 + $0xf8] sm:$0x3] }
  0xa2   :  { %v654_v2 = vld [vmem:[#allocation1 + $0x7c] sm:$0x10]   ;;  %1690 = vrot.lane.b32.xlu0 %v1689_v3, %s2133_s24  ;;  %v752_v13 = vsel %vm647_vm1, %v750_v1, %v748_v0  ;;  %v1715_v26 = vld [vmem:[#allocation1 + $0x29c] sm:$0x20]   ;;  %v1705_v30 = vsel %vm647_vm1, %v1703_v15, %v1701_v24  ;;  %v1993_v32 = vld [vmem:[%s2844_s0 + $0xf0] sm:$0x3]  ;;  %v809_v15 = vpop.permute.xlu0 %808  }
  0xa3   :  { %v715_v4 = vld [vmem:[#allocation1 + $0x23e] sm:$0x4]   ;;  %v656_v27 = vsel %vm655_vm3, %v654_v2, %v652_v10  ;;  %v2021_v33 = vld [vmem:[%s2844_s0 + $0xb8] sm:$0x3]  ;;  %v1709_v35 = vsel %vm651_vm2, %v1707_v16, %v1705_v30  ;;  %v1719_v36 = vld [vmem:[#allocation1 + $0x31b] sm:$0x40]   ;;  %v882_v30 = vpop.permute.xlu1 %881  }
  0xa4   :  { %v696_v11 = vld [vmem:[#allocation1 + $0x1ba] sm:$0x40]   ;;  %23 = vst [vmem:[#allocation1 + $0x3e0] sm:$0x3] %v1989_v31  ;;  %43 = vst [vmem:[#allocation1 + $0x3c0] sm:$0x3] %v1993_v32  ;;  %v1713_v41 = vsel %vm655_vm3, %v1711_v25, %v1709_v35 }
  0xa5   :  { %v719_v12 = vld [vmem:[#allocation1 + $0x25d] sm:$0x8]   ;;  %183 = vst [vmem:[#allocation1 + $0x2e0] sm:$0x3] %v2021_v33  ;;  %v2025_v37 = vld [vmem:[%s2844_s0 + $0xb0] sm:$0x3]  ;;  %v698_v38 = vsel %vm663_vm5, %v696_v11, %v694_v21  ;;  %v1717_v46 = vsel %vm659_vm4, %v1715_v26, %v1713_v41 }
  0xa6   :  { %v754_v14 = vld [vmem:[#allocation1 + $0x35d] sm:$0x8]   ;;  %v1723_v42 = vld [vmem:[#allocation1 + $0x39a] sm:$0x80]   ;;  %203 = vst [vmem:[#allocation1 + $0x2c0] sm:$0x3] %v2025_v37  ;;  %v1721_v49 = vsel %vm663_vm5, %v1719_v36, %v1717_v46 }
  0xa7   :  { %v658_v17 = vld [vmem:[#allocation1 + $0x9b] sm:$0x20]   ;;  %v756_v29 = vsel %vm651_vm2, %v754_v14, %v752_v13  ;;  %v1734_v43 = vld [vmem:[#allocation1 + $0x41] sm:$0x1]   ;;  %v1725_v55 = vsel %vm667_vm6, %v1723_v42, %v1721_v49  ;;  %v919_v36 = vpop.permute.xlu1 %918  }
  0xa8   :  { %v709_v18 = vld [vmem:[#allocation1 + $0x200] sm:$0x1]   ;;  %v660_v44 = vsel %vm659_vm4, %v658_v17, %v656_v27  ;;  %v1740_v47 = vld [vmem:[#allocation1 + $0x13f] sm:$0x4]   ;;  %1726 = vrot.lane.b32.xlu1 %v1725_v55, %s2133_s24 }
  0xa9   :  { %v711_v19 = vld [vmem:[#allocation1 + $0x21f] sm:$0x2]   ;;  %v1744_v48 = vld [vmem:[#allocation1 + $0x1be] sm:$0x8]  }
  0xaa   :  { %v713_v22 = vsel %vm643_vm0, %v711_v19, %v709_v18  ;;  %v758_v23 = vld [vmem:[#allocation1 + $0x37c] sm:$0x10]   ;;  %v1736_v52 = vld [vmem:[#allocation1 + $0xc0] sm:$0x2]  }
  0xab   :  { %v717_v28 = vsel %vm647_vm1, %v715_v4, %v713_v22  ;;  %v723_v34 = vld [vmem:[#allocation1 + $0x27c] sm:$0x10]   ;;  %v760_v45 = vsel %vm655_vm3, %v758_v23, %v756_v29  ;;  %v1738_v57 = vsel %vm643_vm0, %v1736_v52, %v1734_v43  ;;  %v1748_v58 = vld [vmem:[#allocation1 + $0x5d] sm:$0x10]  }
  0xac   :  { %v721_v39 = vsel %vm651_vm2, %v719_v12, %v717_v28  ;;  %v762_v40 = vld [vmem:[#allocation1 + $0x39b] sm:$0x20]   ;;  %v1742_v61 = vsel %vm647_vm1, %v1740_v47, %v1738_v57  ;;  %v1752_v62 = vld [vmem:[#allocation1 + $0xdc] sm:$0x20]  }
  0xad   :  { %v666_v50 = vld [vmem:[#allocation1 + $0xd9] sm:$0x80]   ;;  %v725_v53 = vsel %vm655_vm3, %v723_v34, %v721_v39  ;;  %v764_v60 = vsel %vm659_vm4, %v762_v40, %v760_v45  ;;  %v1756_v63 = vld [vmem:[#allocation1 + $0x15b] sm:$0x40]   ;;  %v1746_v1 = vsel %vm651_vm2, %v1744_v48, %v1742_v61  ;;  %v845_v34 = vpop.permute.xlu0 %844  }
  0xae   :  { %v700_v51 = vld [vmem:[#allocation1 + $0x1d9] sm:$0x80]   ;;  %v1771_v2 = vld [vmem:[#allocation1 + $0x241] sm:$0x1]   ;;  %v1750_v6 = vsel %vm655_vm3, %v1748_v58, %v1746_v1 }
  0xaf   :  { %v727_v54 = vld [vmem:[#allocation1 + $0x29b] sm:$0x20]   ;;  %v702_v56 = vsel %vm667_vm6, %v700_v51, %v698_v38  ;;  %v1777_v3 = vld [vmem:[#allocation1 + $0x33f] sm:$0x4]   ;;  %v1754_v10 = vsel %vm659_vm4, %v1752_v62, %v1750_v6  ;;  %v992_v38 = vpop.permute.xlu1 %991  }
  0xb0   :  { %v662_v59 = vld [vmem:[#allocation1 + $0xba] sm:$0x40]   ;;  %705 = vst.msk [vmem:[#allocation0 + $0x2] ss:$8 sm:$0xf] %vm669_vm7, %v702_v56   ;;  %v729_v5 = vsel %vm659_vm4, %v727_v54, %v725_v53  ;;  %v1758_v16 = vsel %vm663_vm5, %v1756_v63, %v1754_v10 }
  0xb1   :  { %v664_v0 = vsel %vm663_vm5, %v662_v59, %v660_v44  ;;  %707 = vst.msk [vmem:[#allocation0 - $0x1d] ss:$8 sm:$0xf0] %vm669_vm7, %v702_v56   ;;  %v1760_v7 = vld [vmem:[#allocation1 + $0x1da] sm:$0x80]   ;;  %v956_v35 = vpop.permute.xlu0 %955  }
  0xb2   :  { %v668_v4 = vsel %vm667_vm6, %v666_v50, %v664_v0  ;;  %v766_v8 = vld [vmem:[#allocation1 + $0x3ba] sm:$0x40]   ;;  %v1773_v13 = vld [vmem:[#allocation1 + $0x2c0] sm:$0x2]   ;;  %v1762_v21 = vsel %vm667_vm6, %v1760_v7, %v1758_v16 }
  0xb3   :  { %v770_v9 = vld [vmem:[#allocation1 + $0x3d9] sm:$0x80]   ;;  %670 = vst.msk [vmem:[#allocation0] ss:$8 sm:$0xf] %vm669_vm7, %v668_v4   ;;  %v768_v12 = vsel %vm663_vm5, %v766_v8, %v764_v60  ;;  %v1775_v18 = vsel %vm643_vm0, %v1773_v13, %v1771_v2  ;;  %1763 = vrot.lane.b32.xlu0 %v1762_v21, %s2133_s24  ;;  %v1066_v39 = vpop.permute.xlu1 %1065  }
  0xb4   :  { %672 = vst.msk [vmem:[#allocation0 - $0x1f] ss:$8 sm:$0xf0] %vm669_vm7, %v668_v4   ;;  %v735_v11 = vld [vmem:[#allocation1 + $0x2d9] sm:$0x80]   ;;  %v772_v17 = vsel %vm667_vm6, %v770_v9, %v768_v12  ;;  %v1779_v22 = vsel %vm647_vm1, %v1777_v3, %v1775_v18 }
  0xb5   :  { %v1781_v14 = vld [vmem:[#allocation1 + $0x3be] sm:$0x8]   ;;  %811 = vst.msk [vmem:[#allocation0] sm:$0xf] %vm810_vm8, %v809_v15   ;;  %813 = vst.msk [vmem:[#allocation0 + $0x4] sm:$0xf0] %vm810_vm8, %v809_v15   ;;  %v1029_v37 = vpop.permute.xlu0 %1028  }
  0xb6   :  { %v1785_v19 = vld [vmem:[#allocation1 + $0x25d] sm:$0x10]   ;;  %v731_v20 = vld [vmem:[#allocation1 + $0x2ba] sm:$0x40]   ;;  %v1783_v25 = vsel %vm651_vm2, %v1781_v14, %v1779_v22  ;;  %885 = vst.msk [vmem:[#allocation0 + $0x10] sm:$0xf] %vm810_vm8, %v882_v30  }
  0xb7   :  { %v1789_v23 = vld [vmem:[#allocation1 + $0x2dc] sm:$0x20]   ;;  %775 = vst.msk [vmem:[#allocation0 + $0x22] ss:$8 sm:$0xf] %vm669_vm7, %v772_v17   ;;  %v733_v24 = vsel %vm663_vm5, %v731_v20, %v729_v5  ;;  %v1787_v28 = vsel %vm655_vm3, %v1785_v19, %v1783_v25 }
  0xb8   :  { %777 = vst.msk [vmem:[#allocation0 + $0x3] ss:$8 sm:$0xf0] %vm669_vm7, %v772_v17   ;;  %v1793_v26 = vld [vmem:[#allocation1 + $0x35b] sm:$0x40]   ;;  %v737_v27 = vsel %vm667_vm6, %v735_v11, %v733_v24  ;;  %v1791_v31 = vsel %vm659_vm4, %v1789_v23, %v1787_v28 }
  0xb9   :  { %v1797_v29 = vld [vmem:[#allocation1 + $0x3da] sm:$0x80]   ;;  %740 = vst.msk [vmem:[#allocation0 + $0x20] ss:$8 sm:$0xf] %vm669_vm7, %v737_v27   ;;  %v1795_v32 = vsel %vm663_vm5, %v1793_v26, %v1791_v31 }
  0xba   :  { %742 = vst.msk [vmem:[#allocation0 + $0x1] ss:$8 sm:$0xf0] %vm669_vm7, %v737_v27   ;;  %v1799_v33 = vsel %vm667_vm6, %v1797_v29, %v1795_v32  ;;  %v1103_v40 = vpop.permute.xlu0 %1102  }
  0xbb   :  { %887 = vst.msk [vmem:[#allocation0 + $0x14] sm:$0xf0] %vm810_vm8, %v882_v30   ;;  %1800 = vrot.lane.b32.xlu1 %v1799_v33, %s2133_s24  ;;  %848 = vst.msk [vmem:[#allocation0 + $0x20] sm:$0xf] %vm810_vm8, %v845_v34  }
  0xbc   :  { %850 = vst.msk [vmem:[#allocation0 + $0x24] sm:$0xf0] %vm810_vm8, %v845_v34   ;;  %922 = vst.msk [vmem:[#allocation0 + $0x30] sm:$0xf] %vm810_vm8, %v919_v36  }
  0xbd   :  { %958 = vst.msk [vmem:[#allocation0] sm:$0xf] %vm957_vm9, %v956_v35   ;;  %960 = vst.msk [vmem:[#allocation0 + $0x4] sm:$0xf0] %vm957_vm9, %v956_v35  }
  0xbe   :  { %924 = vst.msk [vmem:[#allocation0 + $0x34] sm:$0xf0] %vm810_vm8, %v919_v36  }
  0xbf   :  { %1032 = vst.msk [vmem:[#allocation0 + $0x10] sm:$0xf] %vm957_vm9, %v1029_v37   ;;  %1034 = vst.msk [vmem:[#allocation0 + $0x14] sm:$0xf0] %vm957_vm9, %v1029_v37  }
  0xc0   :  { %995 = vst.msk [vmem:[#allocation0 + $0x20] sm:$0xf] %vm957_vm9, %v992_v38   ;;  %997 = vst.msk [vmem:[#allocation0 + $0x24] sm:$0xf0] %vm957_vm9, %v992_v38  }
  0xc1   :  { %1069 = vst.msk [vmem:[#allocation0 + $0x30] sm:$0xf] %vm957_vm9, %v1066_v39   ;;  %1071 = vst.msk [vmem:[#allocation0 + $0x34] sm:$0xf0] %vm957_vm9, %v1066_v39  }
  0xc2   :  { %1105 = vst.msk [vmem:[#allocation0] sm:$0xf] %vm1104_vm10, %v1103_v40   ;;  %1107 = vst.msk [vmem:[#allocation0 + $0x4] sm:$0xf0] %vm1104_vm10, %v1103_v40   ;;  %v1139_v41 = vpop.permute.xlu1 %1138  }
  0xc3   :  { %1142 = vst.msk [vmem:[#allocation0 + $0x20] sm:$0xf] %vm1104_vm10, %v1139_v41   ;;  %1144 = vst.msk [vmem:[#allocation0 + $0x24] sm:$0xf0] %vm1104_vm10, %v1139_v41  }
  0xcb   :  { %v1176_v42 = vpop.permute.xlu0 %1175  }
  0xcc   :  { %1179 = vst.msk [vmem:[#allocation0 + $0x10] sm:$0xf] %vm1104_vm10, %v1176_v42   ;;  %1181 = vst.msk [vmem:[#allocation0 + $0x14] sm:$0xf0] %vm1104_vm10, %v1176_v42  }
  0xcf   :  { %v1250_v43 = vpop.permute.xlu0 %1249  }
  0xd0   :  { %1252 = vst.msk [vmem:[#allocation0] sm:$0xf] %vm1251_vm11, %v1250_v43   ;;  %1254 = vst.msk [vmem:[#allocation0 + $0x4] sm:$0xf0] %vm1251_vm11, %v1250_v43  }
  0xd3   :  { %v1213_v44 = vpop.permute.xlu1 %1212  }
  0xd4   :  { %1216 = vst.msk [vmem:[#allocation0 + $0x30] sm:$0xf] %vm1104_vm10, %v1213_v44   ;;  %1218 = vst.msk [vmem:[#allocation0 + $0x34] sm:$0xf0] %vm1104_vm10, %v1213_v44  }
  0xd6   :  { %v1323_v45 = vpop.permute.xlu0 %1322  }
  0xd7   :  { %1326 = vst.msk [vmem:[#allocation0 + $0x10] sm:$0xf] %vm1251_vm11, %v1323_v45   ;;  %1328 = vst.msk [vmem:[#allocation0 + $0x14] sm:$0xf0] %vm1251_vm11, %v1323_v45   ;;  %v1286_v46 = vpop.permute.xlu1 %1285  }
  0xd8   :  { %1289 = vst.msk [vmem:[#allocation0 + $0x20] sm:$0xf] %vm1251_vm11, %v1286_v46   ;;  %1291 = vst.msk [vmem:[#allocation0 + $0x24] sm:$0xf0] %vm1251_vm11, %v1286_v46  }
  0xdb   :  { %v1360_v47 = vpop.permute.xlu1 %1359  }
  0xdc   :  { %1363 = vst.msk [vmem:[#allocation0 + $0x30] sm:$0xf] %vm1251_vm11, %v1360_v47   ;;  %1365 = vst.msk [vmem:[#allocation0 + $0x34] sm:$0xf0] %vm1251_vm11, %v1360_v47  }
  0xe5   :  { %v1397_v48 = vpop.permute.xlu0 %1396  }
  0xe6   :  { %1399 = vst.msk [vmem:[#allocation0] sm:$0xf] %vm1398_vm12, %v1397_v48   ;;  %1401 = vst.msk [vmem:[#allocation0 + $0x4] sm:$0xf0] %vm1398_vm12, %v1397_v48  }
  0xee   :  { %v1433_v49 = vpop.permute.xlu1 %1432  }
  0xef   :  { %1436 = vst.msk [vmem:[#allocation0 + $0x20] sm:$0xf] %vm1398_vm12, %v1433_v49   ;;  %1438 = vst.msk [vmem:[#allocation0 + $0x24] sm:$0xf0] %vm1398_vm12, %v1433_v49  }
  0xf6   :  { %v1470_v50 = vpop.permute.xlu0 %1469  }
  0xf7   :  { %1473 = vst.msk [vmem:[#allocation0 + $0x10] sm:$0xf] %vm1398_vm12, %v1470_v50   ;;  %1475 = vst.msk [vmem:[#allocation0 + $0x14] sm:$0xf0] %vm1398_vm12, %v1470_v50  }
  0xfa   :  { %v1544_v51 = vpop.permute.xlu0 %1543  }
  0xfb   :  { %1546 = vst.msk [vmem:[#allocation0] sm:$0xf] %vm1545_vm13, %v1544_v51   ;;  %1548 = vst.msk [vmem:[#allocation0 + $0x4] sm:$0xf0] %vm1545_vm13, %v1544_v51  }
  0xfd   :  { %v1507_v52 = vpop.permute.xlu1 %1506  }
  0xfe   :  { %1510 = vst.msk [vmem:[#allocation0 + $0x30] sm:$0xf] %vm1398_vm12, %v1507_v52   ;;  %1512 = vst.msk [vmem:[#allocation0 + $0x34] sm:$0xf0] %vm1398_vm12, %v1507_v52  }
 0x101   :  { %v1617_v53 = vpop.permute.xlu0 %1616   ;;  %v1580_v54 = vpop.permute.xlu1 %1579  }
 0x102   :  { %1620 = vst.msk [vmem:[#allocation0 + $0x10] sm:$0xf] %vm1545_vm13, %v1617_v53   ;;  %1622 = vst.msk [vmem:[#allocation0 + $0x14] sm:$0xf0] %vm1545_vm13, %v1617_v53  }
 0x103   :  { %1583 = vst.msk [vmem:[#allocation0 + $0x20] sm:$0xf] %vm1545_vm13, %v1580_v54   ;;  %1585 = vst.msk [vmem:[#allocation0 + $0x24] sm:$0xf0] %vm1545_vm13, %v1580_v54  }
 0x106   :  { %v1654_v55 = vpop.permute.xlu1 %1653  }
 0x107   :  { %1657 = vst.msk [vmem:[#allocation0 + $0x30] sm:$0xf] %vm1545_vm13, %v1654_v55   ;;  %1659 = vst.msk [vmem:[#allocation0 + $0x34] sm:$0xf0] %vm1545_vm13, %v1654_v55  }
 0x114   :  { %v1691_v56 = vpop.permute.xlu0 %1690  }
 0x115   :  { %1693 = vst.msk [vmem:[#allocation0] sm:$0xf] %vm1692_vm14, %v1691_v56   ;;  %1695 = vst.msk [vmem:[#allocation0 + $0x4] sm:$0xf0] %vm1692_vm14, %v1691_v56  }
 0x11a   :  { %v1727_v59 = vpop.permute.xlu1 %1726  }
 0x11b   :  { %1730 = vst.msk [vmem:[#allocation0 + $0x20] sm:$0xf] %vm1692_vm14, %v1727_v59   ;;  %1732 = vst.msk [vmem:[#allocation0 + $0x24] sm:$0xf0] %vm1692_vm14, %v1727_v59  }
 0x11c   :  { %v1810_v57 = vld [vmem:[#allocation0] sm:$0xf]  ;;  %v1814_v58 = vld [vmem:[#allocation0 + $0x8] sm:$0xf] }
 0x11d   :  { %1812 = vst [vmem:[%s2845_s1] sm:$0xf] %v1810_v57  ;;  %2113 = vst [vmem:[%s2845_s1 + $0x4] sm:$0xf] %v1814_v58 }
 0x122   :  { %v1831_v61 = vld [vmem:[#allocation0 + $0x20] sm:$0xf]  ;;  %v1837_v62 = vld [vmem:[#allocation0 + $0x28] sm:$0xf] }
 0x123   :  { %2116 = vst [vmem:[%s2845_s1 + $0x10] sm:$0xf] %v1831_v61  ;;  %2117 = vst [vmem:[%s2845_s1 + $0x14] sm:$0xf] %v1837_v62 }
 0x125   :  { %v1764_v60 = vpop.permute.xlu0 %1763  }
 0x126   :  { %1767 = vst.msk [vmem:[#allocation0 + $0x10] sm:$0xf] %vm1692_vm14, %v1764_v60   ;;  %1769 = vst.msk [vmem:[#allocation0 + $0x14] sm:$0xf0] %vm1692_vm14, %v1764_v60  }
 0x12d   :  { %v1801_v63 = vpop.permute.xlu1 %1800   ;;  %v1819_v0 = vld [vmem:[#allocation0 + $0x10] sm:$0xf]  ;;  %v1825_v1 = vld [vmem:[#allocation0 + $0x18] sm:$0xf] }
 0x12e   :  { %1804 = vst.msk [vmem:[#allocation0 + $0x30] sm:$0xf] %vm1692_vm14, %v1801_v63   ;;  %1806 = vst.msk [vmem:[#allocation0 + $0x34] sm:$0xf0] %vm1692_vm14, %v1801_v63  }
 0x12f   :  { %2114 = vst [vmem:[%s2845_s1 + $0x8] sm:$0xf] %v1819_v0  ;;  %2115 = vst [vmem:[%s2845_s1 + $0xc] sm:$0xf] %v1825_v1 }
 0x135   :  { %v1843_v2 = vld [vmem:[#allocation0 + $0x30] sm:$0xf]  ;;  %v1849_v3 = vld [vmem:[#allocation0 + $0x38] sm:$0xf] }
 0x136   :  { %2118 = vst [vmem:[%s2845_s1 + $0x18] sm:$0xf] %v1843_v2  ;;  %2119 = vst [vmem:[%s2845_s1 + $0x1c] sm:$0xf] %v1849_v3 }

// kernel: _repeat_impl.1
= control target key start
LH: loop header
LB: loop body
LE: loop exit
PB: predicated region body
PF: predicated region fallthrough
CT: control target
= control target key end

     0   :  { %v35_v0 = vlaneseq  ;;  %v336_v3 = vmov 1966171168   ;;  %s683_s0 = inlined_call_operand.vmem [shape: f32[2,4,512], index: 0, kind: input, shape index: {}]   ;;  %s684_s1 = inlined_call_operand.vmem [shape: f32[2,2,2,4,2,512], index: 1, kind: output, shape index: {}]  }
   0x1   :  { %v268_v1 = vld.sshfl [vmem:[%s683_s0] sm:$0xff pattern:$0x75316420]  ;;  %v269_v2 = vld.sshfl [vmem:[%s683_s0 + $0x8] sm:$0xff pattern:$0x75316420]  ;;  %v33_v4 = vunpack.c.l.s4 %v336_v3 }
   0x2   :  { %v36_v5 = vshrl.u32 %v35_v0, 7  ;;  %v270_v6 = vld.sshfl [vmem:[%s683_s0 + $0x10] sm:$0xff pattern:$0x75316420]  ;;  %v30_v7 = vcombine.low %v268_v1, %v269_v2  ;;  %v31_v9 = vcombine.high %v268_v1, %v269_v2  ;;  %vm359_vm0 = vcmp.lt.s32.totalorder %v35_v0, 512 }
   0x3   :  { %v34_v8 = vunpack.c.0.s8 %v33_v4  ;;  %v271_v10 = vld.sshfl [vmem:[%s683_s0 + $0x18] sm:$0xff pattern:$0x75316420] }
   0x4   :  { %v62_v11 = vcombine.low %v270_v6, %v271_v10  ;;  %v63_v12 = vcombine.high %v270_v6, %v271_v10 }
   0x5   :  { %v37_v13 = vsub.s32 %v34_v8, %v36_v5 }
   0x7   :  { %v38_v15 = vrot.slane %v30_v7, %v37_v13  ;;  %v45_v16 = vrot.slane %v31_v9, %v37_v13  ;;  %v70_v17 = vrot.slane %v62_v11, %v37_v13  ;;  %v77_v18 = vrot.slane %v63_v12, %v37_v13 }
   0x9   :  { %92 = vst.msk [vmem:[%s684_s1] ss:$2 sm:$0xf] %vm359_vm0, %v38_v15  ;;  %279 = vst.msk [vmem:[%s684_s1 + $0x1] ss:$2 sm:$0xf] %vm359_vm0, %v38_v15  ;;  %v46_v19 = vcombine.high %v38_v15, %v38_v15  ;;  %v47_v20 = vcombine.high %v45_v16, %v45_v16  ;;  %v78_v21 = vcombine.high %v70_v17, %v70_v17 }
   0xa   :  { %287 = vst.msk [vmem:[%s684_s1 + $0x20] ss:$2 sm:$0xf] %vm359_vm0, %v38_v15  ;;  %295 = vst.msk [vmem:[%s684_s1 + $0x21] ss:$2 sm:$0xf] %vm359_vm0, %v38_v15  ;;  %v79_v22 = vcombine.high %v77_v18, %v77_v18 }
   0xb   :  { %303 = vst.msk [vmem:[%s684_s1 + $0x80] ss:$2 sm:$0xf] %vm359_vm0, %v38_v15  ;;  %311 = vst.msk [vmem:[%s684_s1 + $0x81] ss:$2 sm:$0xf] %vm359_vm0, %v38_v15 }
   0xc   :  { %319 = vst.msk [vmem:[%s684_s1 + $0xa0] ss:$2 sm:$0xf] %vm359_vm0, %v38_v15  ;;  %327 = vst.msk [vmem:[%s684_s1 + $0xa1] ss:$2 sm:$0xf] %vm359_vm0, %v38_v15 }
   0xd   :  { %272 = vst.msk [vmem:[%s684_s1 + $0x8] ss:$2 sm:$0xf] %vm359_vm0, %v45_v16  ;;  %280 = vst.msk [vmem:[%s684_s1 + $0x9] ss:$2 sm:$0xf] %vm359_vm0, %v45_v16 }
   0xe   :  { %288 = vst.msk [vmem:[%s684_s1 + $0x28] ss:$2 sm:$0xf] %vm359_vm0, %v45_v16  ;;  %296 = vst.msk [vmem:[%s684_s1 + $0x29] ss:$2 sm:$0xf] %vm359_vm0, %v45_v16 }
   0xf   :  { %304 = vst.msk [vmem:[%s684_s1 + $0x88] ss:$2 sm:$0xf] %vm359_vm0, %v45_v16  ;;  %312 = vst.msk [vmem:[%s684_s1 + $0x89] ss:$2 sm:$0xf] %vm359_vm0, %v45_v16 }
  0x10   :  { %320 = vst.msk [vmem:[%s684_s1 + $0xa8] ss:$2 sm:$0xf] %vm359_vm0, %v45_v16  ;;  %328 = vst.msk [vmem:[%s684_s1 + $0xa9] ss:$2 sm:$0xf] %vm359_vm0, %v45_v16 }
  0x11   :  { %275 = vst.msk [vmem:[%s684_s1 + $0x40] ss:$2 sm:$0xf] %vm359_vm0, %v70_v17  ;;  %283 = vst.msk [vmem:[%s684_s1 + $0x41] ss:$2 sm:$0xf] %vm359_vm0, %v70_v17 }
  0x12   :  { %291 = vst.msk [vmem:[%s684_s1 + $0x60] ss:$2 sm:$0xf] %vm359_vm0, %v70_v17  ;;  %299 = vst.msk [vmem:[%s684_s1 + $0x61] ss:$2 sm:$0xf] %vm359_vm0, %v70_v17 }
  0x13   :  { %307 = vst.msk [vmem:[%s684_s1 + $0xc0] ss:$2 sm:$0xf] %vm359_vm0, %v70_v17  ;;  %315 = vst.msk [vmem:[%s684_s1 + $0xc1] ss:$2 sm:$0xf] %vm359_vm0, %v70_v17 }
  0x14   :  { %323 = vst.msk [vmem:[%s684_s1 + $0xe0] ss:$2 sm:$0xf] %vm359_vm0, %v70_v17  ;;  %331 = vst.msk [vmem:[%s684_s1 + $0xe1] ss:$2 sm:$0xf] %vm359_vm0, %v70_v17 }
  0x15   :  { %276 = vst.msk [vmem:[%s684_s1 + $0x48] ss:$2 sm:$0xf] %vm359_vm0, %v77_v18  ;;  %284 = vst.msk [vmem:[%s684_s1 + $0x49] ss:$2 sm:$0xf] %vm359_vm0, %v77_v18 }
  0x16   :  { %292 = vst.msk [vmem:[%s684_s1 + $0x68] ss:$2 sm:$0xf] %vm359_vm0, %v77_v18  ;;  %300 = vst.msk [vmem:[%s684_s1 + $0x69] ss:$2 sm:$0xf] %vm359_vm0, %v77_v18 }
  0x17   :  { %308 = vst.msk [vmem:[%s684_s1 + $0xc8] ss:$2 sm:$0xf] %vm359_vm0, %v77_v18  ;;  %316 = vst.msk [vmem:[%s684_s1 + $0xc9] ss:$2 sm:$0xf] %vm359_vm0, %v77_v18 }
  0x18   :  { %324 = vst.msk [vmem:[%s684_s1 + $0xe8] ss:$2 sm:$0xf] %vm359_vm0, %v77_v18  ;;  %332 = vst.msk [vmem:[%s684_s1 + $0xe9] ss:$2 sm:$0xf] %vm359_vm0, %v77_v18 }
  0x19   :  { %273 = vst.msk [vmem:[%s684_s1 + $0x10] ss:$2 sm:$0xf] %vm359_vm0, %v46_v19  ;;  %281 = vst.msk [vmem:[%s684_s1 + $0x11] ss:$2 sm:$0xf] %vm359_vm0, %v46_v19 }
  0x1a   :  { %289 = vst.msk [vmem:[%s684_s1 + $0x30] ss:$2 sm:$0xf] %vm359_vm0, %v46_v19  ;;  %297 = vst.msk [vmem:[%s684_s1 + $0x31] ss:$2 sm:$0xf] %vm359_vm0, %v46_v19 }
  0x1b   :  { %305 = vst.msk [vmem:[%s684_s1 + $0x90] ss:$2 sm:$0xf] %vm359_vm0, %v46_v19  ;;  %313 = vst.msk [vmem:[%s684_s1 + $0x91] ss:$2 sm:$0xf] %vm359_vm0, %v46_v19 }
  0x1c   :  { %321 = vst.msk [vmem:[%s684_s1 + $0xb0] ss:$2 sm:$0xf] %vm359_vm0, %v46_v19  ;;  %329 = vst.msk [vmem:[%s684_s1 + $0xb1] ss:$2 sm:$0xf] %vm359_vm0, %v46_v19 }
  0x1d   :  { %274 = vst.msk [vmem:[%s684_s1 + $0x18] ss:$2 sm:$0xf] %vm359_vm0, %v47_v20  ;;  %282 = vst.msk [vmem:[%s684_s1 + $0x19] ss:$2 sm:$0xf] %vm359_vm0, %v47_v20 }
  0x1e   :  { %290 = vst.msk [vmem:[%s684_s1 + $0x38] ss:$2 sm:$0xf] %vm359_vm0, %v47_v20  ;;  %298 = vst.msk [vmem:[%s684_s1 + $0x39] ss:$2 sm:$0xf] %vm359_vm0, %v47_v20 }
  0x1f   :  { %306 = vst.msk [vmem:[%s684_s1 + $0x98] ss:$2 sm:$0xf] %vm359_vm0, %v47_v20  ;;  %314 = vst.msk [vmem:[%s684_s1 + $0x99] ss:$2 sm:$0xf] %vm359_vm0, %v47_v20 }
  0x20   :  { %322 = vst.msk [vmem:[%s684_s1 + $0xb8] ss:$2 sm:$0xf] %vm359_vm0, %v47_v20  ;;  %330 = vst.msk [vmem:[%s684_s1 + $0xb9] ss:$2 sm:$0xf] %vm359_vm0, %v47_v20 }
  0x21   :  { %277 = vst.msk [vmem:[%s684_s1 + $0x50] ss:$2 sm:$0xf] %vm359_vm0, %v78_v21  ;;  %285 = vst.msk [vmem:[%s684_s1 + $0x51] ss:$2 sm:$0xf] %vm359_vm0, %v78_v21 }
  0x22   :  { %293 = vst.msk [vmem:[%s684_s1 + $0x70] ss:$2 sm:$0xf] %vm359_vm0, %v78_v21  ;;  %301 = vst.msk [vmem:[%s684_s1 + $0x71] ss:$2 sm:$0xf] %vm359_vm0, %v78_v21 }
  0x23   :  { %309 = vst.msk [vmem:[%s684_s1 + $0xd0] ss:$2 sm:$0xf] %vm359_vm0, %v78_v21  ;;  %317 = vst.msk [vmem:[%s684_s1 + $0xd1] ss:$2 sm:$0xf] %vm359_vm0, %v78_v21 }
  0x24   :  { %325 = vst.msk [vmem:[%s684_s1 + $0xf0] ss:$2 sm:$0xf] %vm359_vm0, %v78_v21  ;;  %333 = vst.msk [vmem:[%s684_s1 + $0xf1] ss:$2 sm:$0xf] %vm359_vm0, %v78_v21 }
  0x25   :  { %278 = vst.msk [vmem:[%s684_s1 + $0x58] ss:$2 sm:$0xf] %vm359_vm0, %v79_v22  ;;  %286 = vst.msk [vmem:[%s684_s1 + $0x59] ss:$2 sm:$0xf] %vm359_vm0, %v79_v22 }
  0x26   :  { %294 = vst.msk [vmem:[%s684_s1 + $0x78] ss:$2 sm:$0xf] %vm359_vm0, %v79_v22  ;;  %302 = vst.msk [vmem:[%s684_s1 + $0x79] ss:$2 sm:$0xf] %vm359_vm0, %v79_v22 }
  0x27   :  { %310 = vst.msk [vmem:[%s684_s1 + $0xd8] ss:$2 sm:$0xf] %vm359_vm0, %v79_v22  ;;  %318 = vst.msk [vmem:[%s684_s1 + $0xd9] ss:$2 sm:$0xf] %vm359_vm0, %v79_v22 }
  0x28   :  { %326 = vst.msk [vmem:[%s684_s1 + $0xf8] ss:$2 sm:$0xf] %vm359_vm0, %v79_v22  ;;  %334 = vst.msk [vmem:[%s684_s1 + $0xf9] ss:$2 sm:$0xf] %vm359_vm0, %v79_v22 }

</bundles_post_ra>
